<compile_context>
chip_gen: v7x
topology: tpu7x:2x2x1
jax: 0.10.0
libtpu: 0.0.40
codegen_flags: <defaults>
</compile_context>

<pallas_src>
import jax
import jax.numpy as jnp
from jax import lax
from jax.experimental import pallas as pl
from jax.experimental.pallas import tpu as pltpu


# ---------------------------------------------------------------------------
# Kernel
# ---------------------------------------------------------------------------
def _bottleneck_kernel(x_ref, halo_ref, w1_ref, s1_ref, b1_ref,
                       w2_ref, s2_ref, b2_ref, w3_ref, s3_ref, b3_ref,
                       o_ref, h1p_ref, acc_ref):
    """Fused Bottleneck forward for one (batch, row-block) tile.

    x_ref    : (1, TH, W, C4)  bf16  input rows (also the identity residual)
    halo_ref : (1, 2, W, C4)   bf16  row above / below the tile (zeros at edges)
    w1_ref   : (C4, P)         bf16  conv1 1x1 weights
    w2_ref   : (3, 3P, P)      bf16  conv2 3x3 weights, dy-major, dx-im2col rows
    w3_ref   : (P, C4)         bf16  conv3 1x1 weights
    s*/b*    : (1, C)          f32   folded BatchNorm scale / bias
    o_ref    : (1, TH, W, C4)  f32   block output
    h1p_ref  : (TH+2, W+2, P)  f32   scratch: zero-padded conv1 activation
    acc_ref  : (TH*W, P)       f32   scratch: conv2 accumulator
    """
    i = pl.program_id(1)
    nb = pl.num_programs(1)
    _, TH, W, Cin = x_ref.shape
    P = w1_ref.shape[1]
    C4 = w3_ref.shape[1]

    # ---- conv1 (1x1) + bn1 + relu on the halo-extended TH+2 rows ----------
    x_tile = x_ref[0]                                    # (TH, W, Cin) bf16
    halo = halo_ref[0]                                   # (2, W, Cin)  bf16
    x_ext = jnp.concatenate([halo[0:1], x_tile, halo[1:2]], axis=0)
    h1 = jnp.dot(x_ext.reshape((TH + 2) * W, Cin), w1_ref[...],
                 preferred_element_type=jnp.float32)
    h1 = jnp.maximum(h1 * s1_ref[...] + b1_ref[...], 0.0).reshape(TH + 2, W, P)

    # ---- W-direction zero padding in VMEM scratch --------------------------
    h1p_ref[...] = jnp.zeros_like(h1p_ref)
    h1p_ref[:, 1:W + 1, :] = h1

    # Rows outside the image must stay zero (the folded bn1 bias would
    # otherwise leak into the 3x3 conv's zero-padding rows).
    @pl.when(i == 0)
    def _():
        h1p_ref[0] = jnp.zeros((W + 2, P), jnp.float32)

    @pl.when(i == nb - 1)
    def _():
        h1p_ref[TH + 1] = jnp.zeros((W + 2, P), jnp.float32)

    # ---- conv2 (3x3) as dx-im2col: 3 matmuls with K = 3P -------------------
    x3 = jnp.concatenate(
        [h1p_ref[:, 0:W, :], h1p_ref[:, 1:W + 1, :], h1p_ref[:, 2:W + 2, :]],
        axis=-1).astype(jnp.bfloat16)                    # (TH+2, W, 3P)
    acc_ref[...] = jnp.dot(x3[0:TH].reshape(TH * W, 3 * P), w2_ref[0],
                           preferred_element_type=jnp.float32)
    for dy in (1, 2):
        acc_ref[...] += jnp.dot(x3[dy:dy + TH].reshape(TH * W, 3 * P),
                                w2_ref[dy],
                                preferred_element_type=jnp.float32)

    # ---- bn2 + relu + conv3 (1x1) + bn3 + residual + relu -------------------
    h2 = jnp.maximum(acc_ref[...] * s2_ref[...] + b2_ref[...], 0.0)
    h3 = jnp.dot(h2.astype(jnp.bfloat16), w3_ref[...],
                 preferred_element_type=jnp.float32)
    h3 = h3 * s3_ref[...] + b3_ref[...]
    res = x_tile.reshape(TH * W, Cin).astype(jnp.float32)
    o_ref[...] = jnp.maximum(h3 + res, 0.0).reshape(1, TH, W, C4)


# ---------------------------------------------------------------------------
# Wrapper
# ---------------------------------------------------------------------------
def _pick_row_tile(h, target=8):
    for th in range(min(h, target), 0, -1):
        if h % th == 0:
            return th
    return h


def _build_halos(x_nhwc, th):
    """halos[n, 2*i + {0,1}] = image row just above / below row-block i
    (zeros outside the image).  Only 2 rows per block -> tiny HBM traffic."""
    n, h, w, c = x_nhwc.shape
    nb = h // th
    zero = jnp.zeros((n, 1, w, c), x_nhwc.dtype)
    top = jnp.concatenate([zero, x_nhwc[:, th - 1:h - 1:th]], axis=1)  # (n,nb,w,c)
    bot = jnp.concatenate([x_nhwc[:, th::th], zero], axis=1)           # (n,nb,w,c)
    return jnp.stack([top, bot], axis=2).reshape(n, 2 * nb, w, c)


def bottleneck_forward_nhwc(x_nhwc, kp, *, row_tile=8):
    """Fused Bottleneck forward.  x: (N, H, W, C4) bf16 NHWC -> f32 NHWC."""
    N, H, W, Cin = x_nhwc.shape
    P = kp["w1"].shape[1]
    C4 = kp["w3"].shape[1]
    assert Cin == C4, "identity residual requires inplanes == planes*4"
    TH = _pick_row_tile(H, row_tile)
    nb = H // TH
    halos = _build_halos(x_nhwc, TH)

    flops = 2 * N * H * W * (Cin * P + 9 * P * P + P * C4)
    bytes_accessed = int(
        x_nhwc.size * 2 + halos.size * 2 + N * H * W * C4 * 4 +
        sum(int(kp[k].size) * kp[k].dtype.itemsize
            for k in ("w1", "w2r", "w3", "s1", "b1", "s2", "b2", "s3", "b3")))

    const2 = lambda n, i: (0, 0)
    const3 = lambda n, i: (0, 0, 0)

    return pl.pallas_call(
        _bottleneck_kernel,
        out_shape=jax.ShapeDtypeStruct((N, H, W, C4), jnp.float32),
        grid_spec=pltpu.PrefetchScalarGridSpec(
            num_scalar_prefetch=0,
            grid=(N, nb),
            in_specs=[
                pl.BlockSpec((1, TH, W, Cin), lambda n, i: (n, i, 0, 0)),  # x rows
                pl.BlockSpec((1, 2, W, Cin), lambda n, i: (n, i, 0, 0)),   # halo rows
                pl.BlockSpec((Cin, P), const2),                            # w1
                pl.BlockSpec((1, P), const2),                              # s1
                pl.BlockSpec((1, P), const2),                              # b1
                pl.BlockSpec((3, 3 * P, P), const3),                       # w2 (im2col)
                pl.BlockSpec((1, P), const2),                              # s2
                pl.BlockSpec((1, P), const2),                              # b2
                pl.BlockSpec((P, C4), const2),                             # w3
                pl.BlockSpec((1, C4), const2),                             # s3
                pl.BlockSpec((1, C4), const2),                             # b3
            ],
            out_specs=pl.BlockSpec((1, TH, W, C4), lambda n, i: (n, i, 0, 0)),
            scratch_shapes=[
                pltpu.VMEM((TH + 2, W + 2, P), jnp.float32),   # padded conv1 act
                pltpu.VMEM((TH * W, P), jnp.float32),          # conv2 accumulator
            ],
        ),
        compiler_params=pltpu.CompilerParams(
            dimension_semantics=("parallel", "parallel"),
            vmem_limit_bytes=32 * 1024 * 1024,
        ),
        cost_estimate=pl.CostEstimate(flops=flops, transcendentals=0,
                                      bytes_accessed=bytes_accessed),
    )(x_nhwc, halos, kp["w1"], kp["s1"], kp["b1"],
      kp["w2r"], kp["s2"], kp["b2"], kp["w3"], kp["s3"], kp["b3"])


def bottleneck_forward(x_nchw, kp, *, row_tile=8):
    """NCHW adapter matching the PyTorch module interface."""
    # NOTE: boundary transpose/cast is glue only; NHWC/bf16 callers should use
    # bottleneck_forward_nhwc directly to avoid two extra HBM passes.
    x = jnp.transpose(x_nchw, (0, 2, 3, 1)).astype(jnp.bfloat16)
    out = bottleneck_forward_nhwc(x, kp, row_tile=row_tile)
    return jnp.transpose(out, (0, 3, 1, 2))


# ---------------------------------------------------------------------------
# Parameter construction (deterministic, synthetic) + reference
# ---------------------------------------------------------------------------
def make_params(key, inplanes, planes):
    c4 = planes * 4
    ks = jax.random.split(key, 15)
    p = {
        "conv1_w": 0.1 * jax.random.normal(ks[0], (planes, inplanes, 1, 1), jnp.float32),
        "conv2_w": 0.1 * jax.random.normal(ks[1], (planes, planes, 3, 3), jnp.float32),
        "conv3_w": 0.1 * jax.random.normal(ks[2], (c4, planes, 1, 1), jnp.float32),
    }
    def bn(c, k0, k1, k2, k3):
        return (1.0 + 0.1 * jax.random.normal(k0, (c,), jnp.float32),           # gamma
                0.1 * jax.random.normal(k1, (c,), jnp.float32),                 # beta
                0.1 * jax.random.normal(k2, (c,), jnp.float32),                 # running mean
                1.0 + 0.1 * jnp.abs(jax.random.normal(k3, (c,), jnp.float32)))  # running var
    p["bn1"] = bn(planes, ks[3], ks[4], ks[5], ks[6])
    p["bn2"] = bn(planes, ks[7], ks[8], ks[9], ks[10])
    p["bn3"] = bn(c4, ks[11], ks[12], ks[13], ks[14])
    return p


def to_kernel_params(p, eps=1e-5):
    def fold(bn):
        g, b, m, v = bn
        scale = g / jnp.sqrt(v + eps)
        bias = b - m * scale
        return (scale.reshape(1, -1).astype(jnp.float32),
                bias.reshape(1, -1).astype(jnp.float32))
    s1, b1 = fold(p["bn1"]); s2, b2 = fold(p["bn2"]); s3, b3 = fold(p["bn3"])
    planes, inplanes = p["conv1_w"].shape[:2]
    c4 = p["conv3_w"].shape[0]
    w1 = jnp.transpose(p["conv1_w"].reshape(planes, inplanes), (1, 0)).astype(jnp.bfloat16)
    w2_hwio = jnp.transpose(p["conv2_w"], (2, 3, 1, 0))          # OIHW -> HWIO (3,3,P,P)
    w2r = w2_hwio.reshape(3, 3 * planes, planes).astype(jnp.bfloat16)  # (dy, dx*P+in, out)
    w3 = jnp.transpose(p["conv3_w"].reshape(c4, planes), (1, 0)).astype(jnp.bfloat16)
    return {"w1": w1, "w2r": w2r, "w3": w3,
            "s1": s1, "b1": b1, "s2": s2, "b2": b2, "s3": s3, "b3": b3}


def reference_forward(x, p, eps=1e-5):
    """Pure-JAX reference using the same bf16-input / f32-accumulate policy."""
    dn = ("NCHW", "OIHW", "NCHW")
    bf = jnp.bfloat16
    def bn(y, b):
        g, be, m, v = b
        inv = g / jnp.sqrt(v + eps)
        return y * inv[None, :, None, None] + (be - m * inv)[None, :, None, None]
    xb = x.astype(bf)
    y = lax.conv_general_dilated(xb, p["conv1_w"].astype(bf), (1, 1), "VALID",
                                 dimension_numbers=dn,
                                 preferred_element_type=jnp.float32)
    y = jnp.maximum(bn(y, p["bn1"]), 0.0)
    y = lax.conv_general_dilated(y.astype(bf), p["conv2_w"].astype(bf), (1, 1),
                                 ((1, 1), (1, 1)), dimension_numbers=dn,
                                 preferred_element_type=jnp.float32)
    y = jnp.maximum(bn(y, p["bn2"]), 0.0)
    y = lax.conv_general_dilated(y.astype(bf), p["conv3_w"].astype(bf), (1, 1),
                                 "VALID", dimension_numbers=dn,
                                 preferred_element_type=jnp.float32)
    y = bn(y, p["bn3"])
    return jnp.maximum(y + xb.astype(jnp.float32), 0.0)


if __name__ == "__main__":
    inplanes, planes = 32, 8           # inplanes == planes * expansion(4)
    N, H, W = 2, 16, 16

    key = jax.random.PRNGKey(0)
    k_x, k_p = jax.random.split(key)
    x = jax.random.normal(k_x, (N, inplanes, H, W), jnp.float32)   # NCHW like PyTorch
    params = make_params(k_p, inplanes, planes)
    kparams = to_kernel_params(params)

    out = jax.jit(lambda a: bottleneck_forward(a, kparams))(x)
    out = jax.block_until_ready(out)

    ref = jax.block_until_ready(reference_forward(x, params))

    assert out.shape == (N, planes * 4, H, W), out.shape
    max_err = float(jnp.max(jnp.abs(out - ref)))
    assert jnp.allclose(out, ref, rtol=3e-2, atol=3e-2), max_err
    print("KERNEL_OK")
</pallas_src>

<mosaic_0001>
module attributes {stable_mosaic.version = 11 : i64} {
  func.func @_bottleneck_kernel(%arg0: i32, %arg1: i32, %arg2: memref<1x8x16x32xbf16, #tpu.memory_space<vmem>>, %arg3: memref<1x2x16x32xbf16, #tpu.memory_space<vmem>>, %arg4: memref<32x8xbf16, #tpu.memory_space<vmem>>, %arg5: memref<1x8xf32, #tpu.memory_space<vmem>>, %arg6: memref<1x8xf32, #tpu.memory_space<vmem>>, %arg7: memref<3x24x8xbf16, #tpu.memory_space<vmem>>, %arg8: memref<1x8xf32, #tpu.memory_space<vmem>>, %arg9: memref<1x8xf32, #tpu.memory_space<vmem>>, %arg10: memref<8x32xbf16, #tpu.memory_space<vmem>>, %arg11: memref<1x32xf32, #tpu.memory_space<vmem>>, %arg12: memref<1x32xf32, #tpu.memory_space<vmem>>, %arg13: memref<1x8x16x32xf32, #tpu.memory_space<vmem>>, %arg14: memref<10x18x8xf32, #tpu.memory_space<vmem>>, %arg15: memref<128x8xf32, #tpu.memory_space<vmem>>) attributes {dimension_semantics = [#tpu.dimension_semantics<parallel>, #tpu.dimension_semantics<parallel>], iteration_bounds = array<i64: 2, 2>, scalar_prefetch = 0 : i64, scratch_operands = 2 : i64, tpu.core_type = #tpu.core_type<tc>, window_params = [{transform_indices = @transform_0, window_bounds = array<i64: 1, 8, 16, 32>}, {transform_indices = @transform_1, window_bounds = array<i64: 1, 2, 16, 32>}, {pipeline_mode = #tpu.pipeline_mode<synchronous>, transform_indices = @transform_2, window_bounds = array<i64: 32, 8>}, {pipeline_mode = #tpu.pipeline_mode<synchronous>, transform_indices = @transform_3, window_bounds = array<i64: 1, 8>}, {pipeline_mode = #tpu.pipeline_mode<synchronous>, transform_indices = @transform_4, window_bounds = array<i64: 1, 8>}, {pipeline_mode = #tpu.pipeline_mode<synchronous>, transform_indices = @transform_5, window_bounds = array<i64: 3, 24, 8>}, {pipeline_mode = #tpu.pipeline_mode<synchronous>, transform_indices = @transform_6, window_bounds = array<i64: 1, 8>}, {pipeline_mode = #tpu.pipeline_mode<synchronous>, transform_indices = @transform_7, window_bounds = array<i64: 1, 8>}, {pipeline_mode = #tpu.pipeline_mode<synchronous>, transform_indices = @transform_8, window_bounds = array<i64: 8, 32>}, {pipeline_mode = #tpu.pipeline_mode<synchronous>, transform_indices = @transform_9, window_bounds = array<i64: 1, 32>}, {pipeline_mode = #tpu.pipeline_mode<synchronous>, transform_indices = @transform_10, window_bounds = array<i64: 1, 32>}, {transform_indices = @transform_11, window_bounds = array<i64: 1, 8, 16, 32>}]} {
    %c0 = arith.constant 0 : index
    %c0_0 = arith.constant 0 : index
    %c0_1 = arith.constant 0 : index
    %c0_2 = arith.constant 0 : index
    %0 = vector.load %arg2[%c0, %c0_0, %c0_1, %c0_2] : memref<1x8x16x32xbf16, #tpu.memory_space<vmem>>, vector<1x8x16x32xbf16>
    %1 = vector.shape_cast %0 : vector<1x8x16x32xbf16> to vector<8x16x32xbf16>
    %c0_3 = arith.constant 0 : index
    %c0_4 = arith.constant 0 : index
    %c0_5 = arith.constant 0 : index
    %c0_6 = arith.constant 0 : index
    %2 = vector.load %arg3[%c0_3, %c0_4, %c0_5, %c0_6] : memref<1x2x16x32xbf16, #tpu.memory_space<vmem>>, vector<1x2x16x32xbf16>
    %3 = vector.shape_cast %2 : vector<1x2x16x32xbf16> to vector<2x16x32xbf16>
    %4 = vector.extract_strided_slice %3 {offsets = [0, 0, 0], sizes = [1, 16, 32], strides = [1, 1, 1]} : vector<2x16x32xbf16> to vector<1x16x32xbf16>
    %5 = vector.extract_strided_slice %3 {offsets = [1, 0, 0], sizes = [1, 16, 32], strides = [1, 1, 1]} : vector<2x16x32xbf16> to vector<1x16x32xbf16>
    %6 = tpu.concatenate %4, %1, %5 in 0 : vector<1x16x32xbf16>, vector<8x16x32xbf16>, vector<1x16x32xbf16> -> vector<10x16x32xbf16>
    %7 = vector.shape_cast %6 : vector<10x16x32xbf16> to vector<160x32xbf16>
    %c0_7 = arith.constant 0 : index
    %c0_8 = arith.constant 0 : index
    %8 = vector.load %arg4[%c0_7, %c0_8] : memref<32x8xbf16, #tpu.memory_space<vmem>>, vector<32x8xbf16>
    %cst = arith.constant dense<0.000000e+00> : vector<160x8xf32>
    %9 = tpu.matmul %7, %8, %cst {dimension_numbers = #tpu.dot_dimension_numbers<[1], [0], [0], [1], [0, 0, 1, 1], [], []>} : vector<160x32xbf16>, vector<32x8xbf16>, vector<160x8xf32> -> vector<160x8xf32>
    %c0_9 = arith.constant 0 : index
    %c0_10 = arith.constant 0 : index
    %10 = vector.load %arg5[%c0_9, %c0_10] : memref<1x8xf32, #tpu.memory_space<vmem>>, vector<1x8xf32>
    %11 = vector.broadcast %10 : vector<1x8xf32> to vector<160x8xf32>
    %12 = arith.mulf %9, %11 : vector<160x8xf32>
    %c0_11 = arith.constant 0 : index
    %c0_12 = arith.constant 0 : index
    %13 = vector.load %arg6[%c0_11, %c0_12] : memref<1x8xf32, #tpu.memory_space<vmem>>, vector<1x8xf32>
    %14 = vector.broadcast %13 : vector<1x8xf32> to vector<160x8xf32>
    %15 = arith.addf %12, %14 : vector<160x8xf32>
    %cst_13 = arith.constant 0.000000e+00 : f32
    %16 = vector.broadcast %cst_13 : f32 to vector<160x8xf32>
    %17 = arith.maximumf %15, %16 : vector<160x8xf32>
    %18 = vector.shape_cast %17 : vector<160x8xf32> to vector<10x16x8xf32>
    %cst_14 = arith.constant 0.000000e+00 : f32
    %19 = vector.broadcast %cst_14 : f32 to vector<10x18x8xf32>
    %c0_15 = arith.constant 0 : index
    %c0_16 = arith.constant 0 : index
    %c0_17 = arith.constant 0 : index
    %20 = vector.load %arg14[%c0_15, %c0_16, %c0_17] : memref<10x18x8xf32, #tpu.memory_space<vmem>>, vector<10x18x8xf32>
    tpu.vector_store %arg14[%c0_15, %c0_16, %c0_17], %19 {strides = array<i32>} : memref<10x18x8xf32, #tpu.memory_space<vmem>>, vector<10x18x8xf32>,
    %c0_18 = arith.constant 0 : index
    %c1 = arith.constant 1 : index
    %c0_19 = arith.constant 0 : index
    %21 = vector.load %arg14[%c0_18, %c1, %c0_19] : memref<10x18x8xf32, #tpu.memory_space<vmem>>, vector<10x16x8xf32>
    tpu.vector_store %arg14[%c0_18, %c1, %c0_19], %18 {strides = array<i32>} : memref<10x18x8xf32, #tpu.memory_space<vmem>>, vector<10x16x8xf32>,
    %c0_i32 = arith.constant 0 : i32
    %22 = arith.cmpi eq, %arg1, %c0_i32 : i32
    %23 = arith.extui %22 : i1 to i32
    %c0_i32_20 = arith.constant 0 : i32
    %24 = arith.cmpi ne, %23, %c0_i32_20 : i32
    scf.if %24 {
      %cst_71 = arith.constant 0.000000e+00 : f32
      %80 = vector.broadcast %cst_71 : f32 to vector<18x8xf32>
      %c0_72 = arith.constant 0 : index
      %c0_73 = arith.constant 0 : index
      %c0_74 = arith.constant 0 : index
      %81 = vector.load %arg14[%c0_72, %c0_73, %c0_74] : memref<10x18x8xf32, #tpu.memory_space<vmem>>, vector<1x18x8xf32>
      %82 = vector.shape_cast %81 : vector<1x18x8xf32> to vector<18x8xf32>
      %83 = vector.shape_cast %80 : vector<18x8xf32> to vector<1x18x8xf32>
      tpu.vector_store %arg14[%c0_72, %c0_73, %c0_74], %83 {strides = array<i32>} : memref<10x18x8xf32, #tpu.memory_space<vmem>>, vector<1x18x8xf32>,
    } else {
    }
    %c1_i32 = arith.constant 1 : i32
    %25 = arith.cmpi eq, %arg1, %c1_i32 : i32
    %26 = arith.extui %25 : i1 to i32
    %c0_i32_21 = arith.constant 0 : i32
    %27 = arith.cmpi ne, %26, %c0_i32_21 : i32
    scf.if %27 {
      %cst_71 = arith.constant 0.000000e+00 : f32
      %80 = vector.broadcast %cst_71 : f32 to vector<18x8xf32>
      %c9 = arith.constant 9 : index
      %c0_72 = arith.constant 0 : index
      %c0_73 = arith.constant 0 : index
      %81 = vector.load %arg14[%c9, %c0_72, %c0_73] : memref<10x18x8xf32, #tpu.memory_space<vmem>>, vector<1x18x8xf32>
      %82 = vector.shape_cast %81 : vector<1x18x8xf32> to vector<18x8xf32>
      %83 = vector.shape_cast %80 : vector<18x8xf32> to vector<1x18x8xf32>
      tpu.vector_store %arg14[%c9, %c0_72, %c0_73], %83 {strides = array<i32>} : memref<10x18x8xf32, #tpu.memory_space<vmem>>, vector<1x18x8xf32>,
    } else {
    }
    %c0_22 = arith.constant 0 : index
    %c0_23 = arith.constant 0 : index
    %c0_24 = arith.constant 0 : index
    %28 = vector.load %arg14[%c0_22, %c0_23, %c0_24] : memref<10x18x8xf32, #tpu.memory_space<vmem>>, vector<10x16x8xf32>
    %c0_25 = arith.constant 0 : index
    %c1_26 = arith.constant 1 : index
    %c0_27 = arith.constant 0 : index
    %29 = vector.load %arg14[%c0_25, %c1_26, %c0_27] : memref<10x18x8xf32, #tpu.memory_space<vmem>>, vector<10x16x8xf32>
    %c0_28 = arith.constant 0 : index
    %c2 = arith.constant 2 : index
    %c0_29 = arith.constant 0 : index
    %30 = vector.load %arg14[%c0_28, %c2, %c0_29] : memref<10x18x8xf32, #tpu.memory_space<vmem>>, vector<10x16x8xf32>
    %31 = tpu.concatenate %28, %29, %30 in 2 : vector<10x16x8xf32>, vector<10x16x8xf32>, vector<10x16x8xf32> -> vector<10x16x24xf32>
    %32 = arith.truncf %31 : vector<10x16x24xf32> to vector<10x16x24xbf16>
    %33 = vector.extract_strided_slice %32 {offsets = [0, 0, 0], sizes = [8, 16, 24], strides = [1, 1, 1]} : vector<10x16x24xbf16> to vector<8x16x24xbf16>
    %34 = vector.shape_cast %33 : vector<8x16x24xbf16> to vector<128x24xbf16>
    %c0_30 = arith.constant 0 : index
    %c0_31 = arith.constant 0 : index
    %c0_32 = arith.constant 0 : index
    %35 = vector.load %arg7[%c0_30, %c0_31, %c0_32] : memref<3x24x8xbf16, #tpu.memory_space<vmem>>, vector<1x24x8xbf16>
    %36 = vector.shape_cast %35 : vector<1x24x8xbf16> to vector<24x8xbf16>
    %cst_33 = arith.constant dense<0.000000e+00> : vector<128x8xf32>
    %37 = tpu.matmul %34, %36, %cst_33 {dimension_numbers = #tpu.dot_dimension_numbers<[1], [0], [0], [1], [0, 0, 1, 1], [], []>} : vector<128x24xbf16>, vector<24x8xbf16>, vector<128x8xf32> -> vector<128x8xf32>
    %c0_34 = arith.constant 0 : index
    %c0_35 = arith.constant 0 : index
    %38 = vector.load %arg15[%c0_34, %c0_35] : memref<128x8xf32, #tpu.memory_space<vmem>>, vector<128x8xf32>
    tpu.vector_store %arg15[%c0_34, %c0_35], %37 {strides = array<i32>} : memref<128x8xf32, #tpu.memory_space<vmem>>, vector<128x8xf32>,
    %c0_36 = arith.constant 0 : index
    %c0_37 = arith.constant 0 : index
    %39 = vector.load %arg15[%c0_36, %c0_37] : memref<128x8xf32, #tpu.memory_space<vmem>>, vector<128x8xf32>
    %40 = vector.extract_strided_slice %32 {offsets = [1, 0, 0], sizes = [8, 16, 24], strides = [1, 1, 1]} : vector<10x16x24xbf16> to vector<8x16x24xbf16>
    %41 = vector.shape_cast %40 : vector<8x16x24xbf16> to vector<128x24xbf16>
    %c1_38 = arith.constant 1 : index
    %c0_39 = arith.constant 0 : index
    %c0_40 = arith.constant 0 : index
    %42 = vector.load %arg7[%c1_38, %c0_39, %c0_40] : memref<3x24x8xbf16, #tpu.memory_space<vmem>>, vector<1x24x8xbf16>
    %43 = vector.shape_cast %42 : vector<1x24x8xbf16> to vector<24x8xbf16>
    %cst_41 = arith.constant dense<0.000000e+00> : vector<128x8xf32>
    %44 = tpu.matmul %41, %43, %cst_41 {dimension_numbers = #tpu.dot_dimension_numbers<[1], [0], [0], [1], [0, 0, 1, 1], [], []>} : vector<128x24xbf16>, vector<24x8xbf16>, vector<128x8xf32> -> vector<128x8xf32>
    %45 = arith.addf %39, %44 : vector<128x8xf32>
    %c0_42 = arith.constant 0 : index
    %c0_43 = arith.constant 0 : index
    %46 = vector.load %arg15[%c0_42, %c0_43] : memref<128x8xf32, #tpu.memory_space<vmem>>, vector<128x8xf32>
    tpu.vector_store %arg15[%c0_42, %c0_43], %45 {strides = array<i32>} : memref<128x8xf32, #tpu.memory_space<vmem>>, vector<128x8xf32>,
    %c0_44 = arith.constant 0 : index
    %c0_45 = arith.constant 0 : index
    %47 = vector.load %arg15[%c0_44, %c0_45] : memref<128x8xf32, #tpu.memory_space<vmem>>, vector<128x8xf32>
    %48 = vector.extract_strided_slice %32 {offsets = [2, 0, 0], sizes = [8, 16, 24], strides = [1, 1, 1]} : vector<10x16x24xbf16> to vector<8x16x24xbf16>
    %49 = vector.shape_cast %48 : vector<8x16x24xbf16> to vector<128x24xbf16>
    %c2_46 = arith.constant 2 : index
    %c0_47 = arith.constant 0 : index
    %c0_48 = arith.constant 0 : index
    %50 = vector.load %arg7[%c2_46, %c0_47, %c0_48] : memref<3x24x8xbf16, #tpu.memory_space<vmem>>, vector<1x24x8xbf16>
    %51 = vector.shape_cast %50 : vector<1x24x8xbf16> to vector<24x8xbf16>
    %cst_49 = arith.constant dense<0.000000e+00> : vector<128x8xf32>
    %52 = tpu.matmul %49, %51, %cst_49 {dimension_numbers = #tpu.dot_dimension_numbers<[1], [0], [0], [1], [0, 0, 1, 1], [], []>} : vector<128x24xbf16>, vector<24x8xbf16>, vector<128x8xf32> -> vector<128x8xf32>
    %53 = arith.addf %47, %52 : vector<128x8xf32>
    %c0_50 = arith.constant 0 : index
    %c0_51 = arith.constant 0 : index
    %54 = vector.load %arg15[%c0_50, %c0_51] : memref<128x8xf32, #tpu.memory_space<vmem>>, vector<128x8xf32>
    tpu.vector_store %arg15[%c0_50, %c0_51], %53 {strides = array<i32>} : memref<128x8xf32, #tpu.memory_space<vmem>>, vector<128x8xf32>,
    %c0_52 = arith.constant 0 : index
    %c0_53 = arith.constant 0 : index
    %55 = vector.load %arg15[%c0_52, %c0_53] : memref<128x8xf32, #tpu.memory_space<vmem>>, vector<128x8xf32>
    %c0_54 = arith.constant 0 : index
    %c0_55 = arith.constant 0 : index
    %56 = vector.load %arg8[%c0_54, %c0_55] : memref<1x8xf32, #tpu.memory_space<vmem>>, vector<1x8xf32>
    %57 = vector.broadcast %56 : vector<1x8xf32> to vector<128x8xf32>
    %58 = arith.mulf %55, %57 : vector<128x8xf32>
    %c0_56 = arith.constant 0 : index
    %c0_57 = arith.constant 0 : index
    %59 = vector.load %arg9[%c0_56, %c0_57] : memref<1x8xf32, #tpu.memory_space<vmem>>, vector<1x8xf32>
    %60 = vector.broadcast %59 : vector<1x8xf32> to vector<128x8xf32>
    %61 = arith.addf %58, %60 : vector<128x8xf32>
    %cst_58 = arith.constant 0.000000e+00 : f32
    %62 = vector.broadcast %cst_58 : f32 to vector<128x8xf32>
    %63 = arith.maximumf %61, %62 : vector<128x8xf32>
    %64 = arith.truncf %63 : vector<128x8xf32> to vector<128x8xbf16>
    %c0_59 = arith.constant 0 : index
    %c0_60 = arith.constant 0 : index
    %65 = vector.load %arg10[%c0_59, %c0_60] : memref<8x32xbf16, #tpu.memory_space<vmem>>, vector<8x32xbf16>
    %cst_61 = arith.constant dense<0.000000e+00> : vector<128x32xf32>
    %66 = tpu.matmul %64, %65, %cst_61 {dimension_numbers = #tpu.dot_dimension_numbers<[1], [0], [0], [1], [0, 0, 1, 1], [], []>} : vector<128x8xbf16>, vector<8x32xbf16>, vector<128x32xf32> -> vector<128x32xf32>
    %c0_62 = arith.constant 0 : index
    %c0_63 = arith.constant 0 : index
    %67 = vector.load %arg11[%c0_62, %c0_63] : memref<1x32xf32, #tpu.memory_space<vmem>>, vector<1x32xf32>
    %68 = vector.broadcast %67 : vector<1x32xf32> to vector<128x32xf32>
    %69 = arith.mulf %66, %68 : vector<128x32xf32>
    %c0_64 = arith.constant 0 : index
    %c0_65 = arith.constant 0 : index
    %70 = vector.load %arg12[%c0_64, %c0_65] : memref<1x32xf32, #tpu.memory_space<vmem>>, vector<1x32xf32>
    %71 = vector.broadcast %70 : vector<1x32xf32> to vector<128x32xf32>
    %72 = arith.addf %69, %71 : vector<128x32xf32>
    %73 = vector.shape_cast %1 : vector<8x16x32xbf16> to vector<128x32xbf16>
    %74 = arith.extf %73 : vector<128x32xbf16> to vector<128x32xf32>
    %75 = arith.addf %72, %74 : vector<128x32xf32>
    %cst_66 = arith.constant 0.000000e+00 : f32
    %76 = vector.broadcast %cst_66 : f32 to vector<128x32xf32>
    %77 = arith.maximumf %75, %76 : vector<128x32xf32>
    %78 = vector.shape_cast %77 : vector<128x32xf32> to vector<1x8x16x32xf32>
    %c0_67 = arith.constant 0 : index
    %c0_68 = arith.constant 0 : index
    %c0_69 = arith.constant 0 : index
    %c0_70 = arith.constant 0 : index
    %79 = vector.load %arg13[%c0_67, %c0_68, %c0_69, %c0_70] : memref<1x8x16x32xf32, #tpu.memory_space<vmem>>, vector<1x8x16x32xf32>
    tpu.vector_store %arg13[%c0_67, %c0_68, %c0_69, %c0_70], %78 {strides = array<i32>} : memref<1x8x16x32xf32, #tpu.memory_space<vmem>>, vector<1x8x16x32xf32>,
    return
  }
  func.func @transform_0(%arg0: i32, %arg1: i32) -> (i32, i32, i32, i32) {
    %c0_i32 = arith.constant 0 : i32
    %c0_i32_0 = arith.constant 0 : i32
    %c0_i32_1 = arith.constant 0 : i32
    return %arg0, %arg1, %c0_i32, %c0_i32_0 : i32, i32, i32, i32
  }
  func.func @transform_1(%arg0: i32, %arg1: i32) -> (i32, i32, i32, i32) {
    %c0_i32 = arith.constant 0 : i32
    %c0_i32_0 = arith.constant 0 : i32
    %c0_i32_1 = arith.constant 0 : i32
    return %arg0, %arg1, %c0_i32, %c0_i32_0 : i32, i32, i32, i32
  }
  func.func @transform_2(%arg0: i32, %arg1: i32) -> (i32, i32) {
    %c0_i32 = arith.constant 0 : i32
    %c0_i32_0 = arith.constant 0 : i32
    %c0_i32_1 = arith.constant 0 : i32
    return %c0_i32, %c0_i32_0 : i32, i32
  }
  func.func @transform_3(%arg0: i32, %arg1: i32) -> (i32, i32) {
    %c0_i32 = arith.constant 0 : i32
    %c0_i32_0 = arith.constant 0 : i32
    %c0_i32_1 = arith.constant 0 : i32
    return %c0_i32, %c0_i32_0 : i32, i32
  }
  func.func @transform_4(%arg0: i32, %arg1: i32) -> (i32, i32) {
    %c0_i32 = arith.constant 0 : i32
    %c0_i32_0 = arith.constant 0 : i32
    %c0_i32_1 = arith.constant 0 : i32
    return %c0_i32, %c0_i32_0 : i32, i32
  }
  func.func @transform_5(%arg0: i32, %arg1: i32) -> (i32, i32, i32) {
    %c0_i32 = arith.constant 0 : i32
    %c0_i32_0 = arith.constant 0 : i32
    %c0_i32_1 = arith.constant 0 : i32
    %c0_i32_2 = arith.constant 0 : i32
    return %c0_i32, %c0_i32_0, %c0_i32_1 : i32, i32, i32
  }
  func.func @transform_6(%arg0: i32, %arg1: i32) -> (i32, i32) {
    %c0_i32 = arith.constant 0 : i32
    %c0_i32_0 = arith.constant 0 : i32
    %c0_i32_1 = arith.constant 0 : i32
    return %c0_i32, %c0_i32_0 : i32, i32
  }
  func.func @transform_7(%arg0: i32, %arg1: i32) -> (i32, i32) {
    %c0_i32 = arith.constant 0 : i32
    %c0_i32_0 = arith.constant 0 : i32
    %c0_i32_1 = arith.constant 0 : i32
    return %c0_i32, %c0_i32_0 : i32, i32
  }
  func.func @transform_8(%arg0: i32, %arg1: i32) -> (i32, i32) {
    %c0_i32 = arith.constant 0 : i32
    %c0_i32_0 = arith.constant 0 : i32
    %c0_i32_1 = arith.constant 0 : i32
    return %c0_i32, %c0_i32_0 : i32, i32
  }
  func.func @transform_9(%arg0: i32, %arg1: i32) -> (i32, i32) {
    %c0_i32 = arith.constant 0 : i32
    %c0_i32_0 = arith.constant 0 : i32
    %c0_i32_1 = arith.constant 0 : i32
    return %c0_i32, %c0_i32_0 : i32, i32
  }
  func.func @transform_10(%arg0: i32, %arg1: i32) -> (i32, i32) {
    %c0_i32 = arith.constant 0 : i32
    %c0_i32_0 = arith.constant 0 : i32
    %c0_i32_1 = arith.constant 0 : i32
    return %c0_i32, %c0_i32_0 : i32, i32
  }
  func.func @transform_11(%arg0: i32, %arg1: i32) -> (i32, i32, i32, i32) {
    %c0_i32 = arith.constant 0 : i32
    %c0_i32_0 = arith.constant 0 : i32
    %c0_i32_1 = arith.constant 0 : i32
    return %arg0, %arg1, %c0_i32, %c0_i32_0 : i32, i32, i32, i32
  }
}

</mosaic_0001>

<bundles_post_ra>
// kernel: _lambda_.1
= control target key start
LH: loop header
LB: loop body
LE: loop exit
PB: predicated region body
PF: predicated region fallthrough
CT: control target
= control target key end

     0   :  { %s3288_s0 = inlined_call_operand.vmem [shape: bf16[2,16,16,32], index: 0, kind: input, shape index: {}]   ;;  %s3289_s1 = inlined_call_operand.vmem [shape: bf16[2,4,16,32], index: 1, kind: input, shape index: {}]   ;;  %s3290_s2 = inlined_call_operand.vmem [shape: bf16[32,8], index: 2, kind: input, shape index: {}]   ;;  %s3291_s3 = inlined_call_operand.vmem [shape: f32[1,8], index: 3, kind: input, shape index: {}]   ;;  %s3292_s4 = inlined_call_operand.vmem [shape: f32[1,8], index: 4, kind: input, shape index: {}]   ;;  %s3293_s5 = inlined_call_operand.vmem [shape: bf16[3,24,8], index: 5, kind: input, shape index: {}]   ;;  %s3294_s6 = inlined_call_operand.vmem [shape: f32[1,8], index: 6, kind: input, shape index: {}]   ;;  %s3295_s7 = inlined_call_operand.vmem [shape: f32[1,8], index: 7, kind: input, shape index: {}]   ;;  %s3296_s8 = inlined_call_operand.vmem [shape: bf16[8,32], index: 8, kind: input, shape index: {}]   ;;  %s3297_s9 = inlined_call_operand.vmem [shape: f32[1,32], index: 9, kind: input, shape index: {}]   ;;  %s3298_s10 = inlined_call_operand.vmem [shape: f32[1,32], index: 10, kind: input, shape index: {}]   ;;  %s3299_s11 = inlined_call_operand.hbm [shape: f32[2,16,16,32], index: 11, kind: output, shape index: {}]  }
   0x1   :  { %3311 = sst [smem:[#allocation16_spill]] %s3290_s2 }
   0x2   :  { %3312 = sst [smem:[#allocation17_spill]] %s3299_s11 }
   0x3   :  { %16 = vsyncpa [#allocation5], 0 }
   0x4   :  { %18 = vsyncpa [#allocation5 + $0x1], 0  ;;  %s2651_s17 = smov 0   ;;  %s2653_s18 = smov 0  }
   0x5   :  { %s2655_s19 = smov 0   ;;  %s2657_s20 = smov 0  }
   0x6   :  { %s2659_s21 = smov 0   ;;  %s2661_s22 = smov 0  }
   0x7   :  { %s2663_s23 = smov 0   ;;  %s2665_s24 = smov 0  }
   0x8 LB: > { %3313 = sst [smem:[#allocation7_spill]] %s2554_s17  ;;  %s2027_s25 = sadd.s32 4294967295, %s2582_s24   ;;  %s2582_s24 = sphi %s2665_s24, %s24_s24   ;;  %s2578_s23 = sphi %s2663_s23, %s3336_s23   ;;  %s2574_s22 = sphi %s2661_s22, %s3335_s22   ;;  %s2570_s21 = sphi %s2659_s21, %s3334_s21   ;;  %s2566_s20 = sphi %s2657_s20, %s3333_s20   ;;  %s2562_s19 = sphi %s2655_s19, %s3332_s19   ;;  %s2558_s18 = sphi %s2653_s18, %s3338_s18   ;;  %s2554_s17 = sphi %s2651_s17, %s3337_s17  }
   0x9   : > { %3314 = sst [smem:[#allocation8_spill]] %s2562_s19  ;;  %s2028_s26 = sadd.s32 4294967294, %s2582_s24  }
   0xa   : > { %3315 = sst [smem:[#allocation9_spill]] %s2574_s22  ;;  %s33_s27 = sadd.s32 1, %s2574_s22 }
   0xb   : > { %3316 = sst [smem:[#allocation10_spill]] %s2578_s23  ;;  %p34_p0 = scmp.ge.s32.totalorder %s33_s27, 2 }
   0xc   : > { %3317 = sst [smem:[#allocation11_spill]] %s2582_s24  ;;  %s36_s28 = sadd.s32 1, %s2578_s23 }
   0xd   : > { %p300_p1 = scmp.ne.s32.totalorder %s2562_s19, %s2558_s18  ;;  %p301_p2 = scmp.eq.s32.totalorder %s2027_s25, 3 }
   0xe   : > { %s3340_s27 = smov (%p34_p0, %s33_s27), 0  ;;  %s3342_s28 = smov (!%p34_p0, %s36_s28), %s2578_s23 }
   0xf   : > { %3318 = sst [smem:[#allocation12_spill]] %s3340_s27  ;;  %s286_s29 = ssub.s32 %s2574_s22, %s3340_s27 }
  0x10   : > { %p2702_p3 = por %p301_p2, %p300_p1  ;;  %p38_p4 = scmp.ge.s32.totalorder %s3342_s28, 2 }
  0x11   : > { %p306_p5 = scmp.ne.s32.totalorder %s2558_s18, %s2554_s17  ;;  %p307_p6 = scmp.eq.s32.totalorder %s2028_s26, 3 }
  0x12   : > { %p2031_p7 = scmp.ge.s32.totalorder %s2582_s24, 1  ;;  %s3344_s28 = smov (%p38_p4, %s3342_s28), 0 }
  0x13   : > { %3320 = sst [smem:[#allocation13_spill]] %s3344_s28  ;;  %p2711_p8 = por %p307_p6, %p306_p5 }
  0x14   : > { %p380_p9 = scmp.lt.s32.totalorder %s2582_s24, 5  ;;  %s285_s13 = ssub.s32 %s2578_s23, %s3344_s28 }
  0x15   : > { %s3321_s12 = scalar_select %p2711_p8, 1, 0 }
  0x16   : > { %s290_s14 = sadd.s32 1, %s2562_s19  ;;  %s287_s15 = sor.u32 %s286_s29, %s285_s13 }
  0x17   : > { %3322 = sst [smem:[#allocation14_spill]] %s3321_s12  ;;  %p381_p10 = pnand %p2031_p7, %p380_p9 }
  0x18   : > { %p288_p11 = scmp.eq.s32.totalorder %s287_s15, 0  ;;  %s3304_s25 = sand.u32 (!%p381_p10), 1, %s2558_s18   ;;  %vm545_vm0 = vcmask (!%p381_p10), 261120   ;;  %vm763_vm1 = vcmask (!%p381_p10), 64512   ;;  %v2584_v12 = vmov (!%p381_p10), 0.0   ;;  %vm766_vm2 = vcmask (!%p381_p10), 58368  }
  0x19   : > { %384 = sbr.rel (%p381_p10) target bundleno = 971 (0x3cb), region = 64  ;;  %s3324_s2 = sld [smem:[#allocation16_spill]] (!%p381_p10)  ;;  %768 = vst.msk [vmem:[#allocation2 + $0x18] sm:$0xff] (!%p381_p10), %vm763_vm1, %v2584_v12  ;;  %769 = vst.msk [vmem:[#allocation2 + $0x20] sm:$0xff] (!%p381_p10), %vm763_vm1, %v2584_v12  ;;  %v2810_v13 = vld [vmem:[%s3291_s3] ss:$0 sm:$0xff] (!%p381_p10) }
  0x1a   : > { %s2720_s16 = scalar_select %p288_p11, %s2562_s19, %s290_s14  }
  0x1b   : > { %s2728_s28 = sshll.u32 (!%p381_p10), %s3304_s25, 7  ;;  %s2033_s14 = sshll.u32 (!%p381_p10), %s2566_s20, 3  ;;  %764 = vst.msk [vmem:[#allocation2] sm:$0xff] (!%p381_p10), %vm763_vm1, %v2584_v12  ;;  %765 = vst.msk [vmem:[#allocation2 + $0x8] sm:$0xff] (!%p381_p10), %vm763_vm1, %v2584_v12  ;;  %v2815_v15 = vld [vmem:[%s3292_s4] ss:$0 sm:$0xff] (!%p381_p10) }
  0x1c   : > { %3323 = sst [smem:[#allocation15_spill]] %s2720_s16  ;;  %p436_p12 = scmp.lt.s32.totalorder (!%p381_p10), %s2570_s21, 1  ;;  %771 = vst.msk [vmem:[#allocation2 + $0x30] sm:$0xff] (!%p381_p10), %vm763_vm1, %v2584_v12  ;;  %772 = vst.msk [vmem:[#allocation2 + $0x38] sm:$0xff] (!%p381_p10), %vm763_vm1, %v2584_v12 }
  0x1d   : > { %p438_p13 = scmp.lt.s32.totalorder (!%p381_p10), %s2033_s14, 15  ;;  %s2037_s15 = sshll.u32 (!%p381_p10), %s2566_s20, 1  ;;  %774 = vst.msk [vmem:[#allocation2 + $0x48] sm:$0xff] (!%p381_p10), %vm763_vm1, %v2584_v12  ;;  %775 = vst.msk [vmem:[#allocation2 + $0x50] sm:$0xff] (!%p381_p10), %vm763_vm1, %v2584_v12 }
  0x1e   : > { %p449_p0 = scmp.lt.s32.totalorder (!%p381_p10), %s2037_s15, 3  ;;  %777 = vst.msk [vmem:[#allocation2 + $0x60] sm:$0xff] (!%p381_p10), %vm763_vm1, %v2584_v12  ;;  %778 = vst.msk [vmem:[#allocation2 + $0x68] sm:$0xff] (!%p381_p10), %vm763_vm1, %v2584_v12  ;;  %p2065_p1 = scmp.ne.s32.totalorder (!%p381_p10), %s2566_s20, 0 }
  0x1f   : > { %v2362_v0 = vld [vmem:[%s3324_s2] sm:$0xff] (!%p381_p10)   ;;  %v2363_v1 = vld [vmem:[%s3324_s2 + $0x8] sm:$0xff] (!%p381_p10)   ;;  %780 = vst.msk [vmem:[#allocation2 + $0x78] sm:$0xff] (!%p381_p10), %vm763_vm1, %v2584_v12  ;;  %781 = vst.msk [vmem:[#allocation2 + $0x80] sm:$0xff] (!%p381_p10), %vm763_vm1, %v2584_v12 }
  0x20   : > { %2174 = vmatprep.subr.bf16.mxu0 %v2362_v0  ;;  %s437_s23 = scalar_select %p436_p12, %s2570_s21, 1  ;;  %783 = vst.msk [vmem:[#allocation2 + $0x90] sm:$0xff] %vm763_vm1, %v2584_v12  ;;  %784 = vst.msk [vmem:[#allocation2 + $0x98] sm:$0xff] %vm763_vm1, %v2584_v12 }
  0x21   : > { %2175 = vmatpush3.bf16.msra.mxu0 %v2362_v0  ;;  %s3346_s14 = smov (!%p438_p13, %s2033_s14), 15  ;;  %s3348_s15 = smov (!%p449_p0, %s2037_s15), 3  ;;  %786 = vst.msk [vmem:[#allocation2 + $0xa8] sm:$0xff] %vm763_vm1, %v2584_v12  ;;  %787 = vst.msk [vmem:[#allocation2 + $0xb0] sm:$0xff] %vm763_vm1, %v2584_v12 }
  0x22   : > { %2176 = vmatprep.subr.bf16.mxu0 %v2363_v1  ;;  %s2035_s22 = sshll.u32 %s437_s23, 5  ;;  %s2034_s27 = sshll.u32 %s3346_s14, 1  ;;  %789 = vst.msk [vmem:[#allocation2 + $0xc0] sm:$0xff] %vm763_vm1, %v2584_v12  ;;  %790 = vst.msk [vmem:[#allocation2 + $0xc8] sm:$0xff] %vm763_vm1, %v2584_v12 }
  0x23   : > { %s442_s26 = sadd.s32 %s2035_s22, %s2034_s27  ;;  %s2039_s13 = sshll.u32 %s437_s23, 3  ;;  %792 = vst.msk [vmem:[#allocation2 + $0xd8] sm:$0xff] %vm763_vm1, %v2584_v12  ;;  %793 = vst.msk [vmem:[#allocation2 + $0xe0] sm:$0xff] %vm763_vm1, %v2584_v12 }
  0x24   : > { %s2036_s25 = sshll.u32 %s442_s26, 2  ;;  %s2038_s2 = sshll.u32 %s3348_s15, 1  ;;  %770 = vst.msk [vmem:[#allocation2 + $0x28] sm:$0x3] %vm766_vm2, %v2584_v12  ;;  %767 = vst.msk [vmem:[#allocation2 + $0x10] sm:$0x3] %vm766_vm2, %v2584_v12 }
  0x25   : > { %2177 = vmatpush3.bf16.msra.mxu0 %v2363_v1  ;;  %s444_s29 = scalar_lea.vmem %s3288_s0, %s2036_s25  ;;  %s453_s12 = sadd.s32 %s2039_s13, %s2038_s2  ;;  %773 = vst.msk [vmem:[#allocation2 + $0x40] sm:$0x3] %vm766_vm2, %v2584_v12  ;;  %776 = vst.msk [vmem:[#allocation2 + $0x58] sm:$0x3] %vm766_vm2, %v2584_v12 }
  0x26   : > { %v2740_v2 = vld [vmem:[%s444_s29] sm:$0xff]   ;;  %v2742_v3 = vld [vmem:[%s444_s29 + $0x8] sm:$0xff]   ;;  %s2040_s17 = sshll.u32 %s453_s12, 2  ;;  %v2752_v5 = vld [vmem:[%s444_s29 + $0x10] sm:$0xff]   ;;  %779 = vst.msk [vmem:[#allocation2 + $0x70] sm:$0x3] %vm766_vm2, %v2584_v12 }
  0x27   : > { %s455_s14 = scalar_lea.vmem %s3289_s1, %s2040_s17  ;;  %v2754_v6 = vld [vmem:[%s444_s29 + $0x18] sm:$0xff]   ;;  %v2760_v7 = vld [vmem:[%s444_s29 + $0x20] sm:$0xff]   ;;  %v2762_v8 = vld [vmem:[%s444_s29 + $0x28] sm:$0xff]   ;;  %782 = vst.msk [vmem:[#allocation2 + $0x88] sm:$0x3] %vm766_vm2, %v2584_v12  ;;  %s2878_s22 = scalar_lea.vmem [#allocation4], %s2728_s28 }
  0x28   : > { %v2364_v4 = vld [vmem:[%s455_s14] sm:$0xff]   ;;  %v2768_v9 = vld [vmem:[%s444_s29 + $0x30] sm:$0xff]   ;;  %v2770_v10 = vld [vmem:[%s444_s29 + $0x38] sm:$0xff]   ;;  %785 = vst.msk [vmem:[#allocation2 + $0xa0] sm:$0x3] %vm766_vm2, %v2584_v12 }
  0x29   : > { %2178 = vmatprep.mubr.msk.bf16.mxu0 %vm545_vm0, %v2364_v4  ;;  %v2373_v11 = vld [vmem:[%s455_s14 + $0x8] sm:$0xff]   ;;  %788 = vst.msk [vmem:[#allocation2 + $0xb8] sm:$0x3] %vm766_vm2, %v2584_v12  ;;  %791 = vst.msk [vmem:[#allocation2 + $0xd0] sm:$0x3] %vm766_vm2, %v2584_v12 }
  0x2a   : > { %2179 = vmatmul.mubr.msk.bf16.vlgmr.msra.gmra.mrb[0].mxu0 %vm545_vm0, %v2740_v2  ;;  %794 = vst.msk [vmem:[#allocation2 + $0xe8] sm:$0x3] %vm766_vm2, %v2584_v12 }
  0x2b   : > { %2182 = vmatprep.mubr.msk.bf16.mxu0 %vm545_vm0, %v2742_v3 }
  0x32   : > { %2183 = vmatmul.mubr.msk.bf16.gmra.mrb[4].mxu0 %vm545_vm0, %v2752_v5 }
  0x33   : > { %2186 = vmatprep.mubr.msk.bf16.mxu0 %vm545_vm0, %v2754_v6 }
  0x3a   : > { %2187 = vmatmul.mubr.msk.bf16.gmra.mrb[8].mxu0 %vm545_vm0, %v2760_v7 }
  0x3b   : > { %2190 = vmatprep.mubr.msk.bf16.mxu0 %vm545_vm0, %v2762_v8 }
  0x42   : > { %2191 = vmatmul.mubr.msk.bf16.gmra.mrb[12].mxu0 %vm545_vm0, %v2768_v9 }
  0x43   : > { %2194 = vmatprep.mubr.msk.bf16.mxu0 %vm545_vm0, %v2770_v10 }
  0x4a   : > { %2195 = vmatmul.mubr.msk.bf16.gmra.mrb[16].mxu0 %vm545_vm0, %v2373_v11 }
  0xfd   : > { %v2180_v14 = vpop.f32.mrb[0].mxu0 }
  0xfe   : > { %v698_v16 = vmul.f32 %v2180_v14, %v2810_v13  ;;  %v610_v17 = vpop.f32.mrb[1].mxu0 }
  0xff   : > { %v696_v18 = vmul.f32 %v2810_v13, %v610_v17  ;;  %v2181_v19 = vpop.f32.mrb[2].mxu0 }
 0x100   : > { %v725_v20 = vadd.f32 %v2815_v15, %v698_v16  ;;  %v699_v21 = vmul.f32 %v2181_v19, %v2810_v13  ;;  %v613_v22 = vpop.f32.mrb[3].mxu0 }
 0x101   : > { %v723_v23 = vadd.f32 %v2815_v15, %v696_v18  ;;  %v697_v24 = vmul.f32 %v2810_v13, %v613_v22 }
 0x102   : > { %v745_v25 = vmax.f32 %v725_v20, 0.0  ;;  %v726_v26 = vadd.f32 %v2815_v15, %v699_v21 }
 0x103   : > { %v743_v27 = vmax.f32 %v723_v23, 0.0  ;;  %v724_v28 = vadd.f32 %v2815_v15, %v697_v24 }
 0x104   : > { %797 = vst.msk [vmem:[#allocation2 + $0x19] sm:$0xff] %vm763_vm1, %v745_v25  ;;  %v746_v29 = vmax.f32 %v726_v26, 0.0 }
 0x105   : > { %795 = vst.msk [vmem:[#allocation2 + $0x1] sm:$0xff] %vm763_vm1, %v743_v27  ;;  %v744_v30 = vmax.f32 %v724_v28, 0.0  ;;  %v2184_v31 = vpop.f32.mrb[4].mxu0 }
 0x106   : > { %798 = vst.msk [vmem:[#allocation2 + $0x21] sm:$0xff] %vm763_vm1, %v746_v29  ;;  %v702_v32 = vmul.f32 %v2184_v31, %v2810_v13  ;;  %v626_v33 = vpop.f32.mrb[5].mxu0 }
 0x107   : > { %796 = vst.msk [vmem:[#allocation2 + $0x9] sm:$0xff] %vm763_vm1, %v744_v30  ;;  %v700_v34 = vmul.f32 %v2810_v13, %v626_v33  ;;  %v2185_v35 = vpop.f32.mrb[6].mxu0 }
 0x108   : > { %v729_v36 = vadd.f32 %v2815_v15, %v702_v32  ;;  %v703_v37 = vmul.f32 %v2185_v35, %v2810_v13  ;;  %v629_v38 = vpop.f32.mrb[7].mxu0 }
 0x109   : > { %v727_v39 = vadd.f32 %v2815_v15, %v700_v34  ;;  %v701_v40 = vmul.f32 %v2810_v13, %v629_v38 }
 0x10a   : > { %v749_v41 = vmax.f32 %v729_v36, 0.0  ;;  %v730_v42 = vadd.f32 %v2815_v15, %v703_v37 }
 0x10b   : > { %v747_v43 = vmax.f32 %v727_v39, 0.0  ;;  %v728_v44 = vadd.f32 %v2815_v15, %v701_v40 }
 0x10c   : > { %801 = vst.msk [vmem:[#allocation2 + $0x49] sm:$0xff] %vm763_vm1, %v749_v41  ;;  %v750_v45 = vmax.f32 %v730_v42, 0.0 }
 0x10d   : > { %799 = vst.msk [vmem:[#allocation2 + $0x31] sm:$0xff] %vm763_vm1, %v747_v43  ;;  %v748_v46 = vmax.f32 %v728_v44, 0.0  ;;  %v2188_v47 = vpop.f32.mrb[8].mxu0 }
 0x10e   : > { %802 = vst.msk [vmem:[#allocation2 + $0x51] sm:$0xff] %vm763_vm1, %v750_v45  ;;  %v706_v48 = vmul.f32 %v2188_v47, %v2810_v13  ;;  %v642_v49 = vpop.f32.mrb[9].mxu0 }
 0x10f   : > { %800 = vst.msk [vmem:[#allocation2 + $0x39] sm:$0xff] %vm763_vm1, %v748_v46  ;;  %v704_v50 = vmul.f32 %v2810_v13, %v642_v49  ;;  %v2189_v51 = vpop.f32.mrb[10].mxu0 }
 0x110   : > { %v733_v52 = vadd.f32 %v2815_v15, %v706_v48  ;;  %v707_v53 = vmul.f32 %v2189_v51, %v2810_v13  ;;  %v645_v54 = vpop.f32.mrb[11].mxu0 }
 0x111   : > { %v731_v55 = vadd.f32 %v2815_v15, %v704_v50  ;;  %v705_v56 = vmul.f32 %v2810_v13, %v645_v54 }
 0x112   : > { %v753_v57 = vmax.f32 %v733_v52, 0.0  ;;  %v734_v58 = vadd.f32 %v2815_v15, %v707_v53 }
 0x113   : > { %v751_v59 = vmax.f32 %v731_v55, 0.0  ;;  %v732_v60 = vadd.f32 %v2815_v15, %v705_v56 }
 0x114   : > { %805 = vst.msk [vmem:[#allocation2 + $0x79] sm:$0xff] %vm763_vm1, %v753_v57  ;;  %v754_v61 = vmax.f32 %v734_v58, 0.0 }
 0x115   : > { %803 = vst.msk [vmem:[#allocation2 + $0x61] sm:$0xff] %vm763_vm1, %v751_v59  ;;  %v752_v62 = vmax.f32 %v732_v60, 0.0  ;;  %v2192_v63 = vpop.f32.mrb[12].mxu0 }
 0x116   : > { %806 = vst.msk [vmem:[#allocation2 + $0x81] sm:$0xff] %vm763_vm1, %v754_v61  ;;  %v710_v0 = vmul.f32 %v2192_v63, %v2810_v13  ;;  %v658_v1 = vpop.f32.mrb[13].mxu0 }
 0x117   : > { %804 = vst.msk [vmem:[#allocation2 + $0x69] sm:$0xff] %vm763_vm1, %v752_v62  ;;  %v708_v4 = vmul.f32 %v2810_v13, %v658_v1  ;;  %v2193_v11 = vpop.f32.mrb[14].mxu0 }
 0x118   : > { %v737_v12 = vadd.f32 %v2815_v15, %v710_v0  ;;  %v711_v14 = vmul.f32 %v2193_v11, %v2810_v13  ;;  %v661_v16 = vpop.f32.mrb[15].mxu0 }
 0x119   : > { %v735_v17 = vadd.f32 %v2815_v15, %v708_v4  ;;  %v709_v18 = vmul.f32 %v2810_v13, %v661_v16 }
 0x11a   : > { %v757_v19 = vmax.f32 %v737_v12, 0.0  ;;  %v738_v20 = vadd.f32 %v2815_v15, %v711_v14 }
 0x11b   : > { %v755_v21 = vmax.f32 %v735_v17, 0.0  ;;  %v736_v22 = vadd.f32 %v2815_v15, %v709_v18 }
 0x11c   : > { %809 = vst.msk [vmem:[#allocation2 + $0xa9] sm:$0xff] %vm763_vm1, %v757_v19  ;;  %v758_v23 = vmax.f32 %v738_v20, 0.0 }
 0x11d   : > { %807 = vst.msk [vmem:[#allocation2 + $0x91] sm:$0xff] %vm763_vm1, %v755_v21  ;;  %v756_v24 = vmax.f32 %v736_v22, 0.0  ;;  %v2196_v25 = vpop.f32.mrb[16].mxu0 }
 0x11e   : > { %810 = vst.msk [vmem:[#allocation2 + $0xb1] sm:$0xff] %vm763_vm1, %v758_v23  ;;  %v714_v26 = vmul.f32 %v2196_v25, %v2810_v13  ;;  %v674_v27 = vpop.f32.mrb[17].mxu0 }
 0x11f   : > { %808 = vst.msk [vmem:[#allocation2 + $0x99] sm:$0xff] %vm763_vm1, %v756_v24  ;;  %v712_v28 = vmul.f32 %v2810_v13, %v674_v27  ;;  %v2197_v29 = vpop.f32.mrb[18].mxu0 }
 0x120   : > { %v741_v30 = vadd.f32 %v2815_v15, %v714_v26  ;;  %v715_v31 = vmul.f32 %v2197_v29, %v2810_v13  ;;  %v677_v32 = vpop.f32.mrb[19].mxu0 }
 0x121   : > { %v739_v33 = vadd.f32 %v2815_v15, %v712_v28  ;;  %v713_v34 = vmul.f32 %v2810_v13, %v677_v32  ;;  %818 = sbr.rel (%p2065_p1) target bundleno = 296 (0x128), region = 68  ;;  %v2585_v13 = vmov (!%p2065_p1), 0.0  }
 0x122   : > { %v761_v35 = vmax.f32 %v741_v30, 0.0  ;;  %v742_v36 = vadd.f32 %v2815_v15, %v715_v31  ;;  %819 = vst.msk [vmem:[#allocation2] sm:$0xff] (!%p2065_p1), %vm763_vm1, %v2585_v13  ;;  %820 = vst.msk [vmem:[#allocation2 + $0x8] sm:$0xff] (!%p2065_p1), %vm763_vm1, %v2585_v13 }
 0x123   : > { %v759_v37 = vmax.f32 %v739_v33, 0.0  ;;  %v740_v38 = vadd.f32 %v2815_v15, %v713_v34  ;;  %821 = vst.msk [vmem:[#allocation2 + $0x10] sm:$0x3] (!%p2065_p1), %vm766_vm2, %v2585_v13 }
 0x124   : > { %813 = vst.msk [vmem:[#allocation2 + $0xd9] sm:$0xff] %vm763_vm1, %v761_v35  ;;  %v762_v39 = vmax.f32 %v742_v36, 0.0 }
 0x125   : > { %811 = vst.msk [vmem:[#allocation2 + $0xc1] sm:$0xff] %vm763_vm1, %v759_v37  ;;  %v760_v40 = vmax.f32 %v740_v38, 0.0 }
 0x126   : > { %814 = vst.msk [vmem:[#allocation2 + $0xe1] sm:$0xff] %vm763_vm1, %v762_v39 }
 0x127   : > { %812 = vst.msk [vmem:[#allocation2 + $0xc9] sm:$0xff] %vm763_vm1, %v760_v40 }
 0x128 PF: > { %p2066_p2 = scmp.ne.s32.totalorder %s2566_s20, 1 }
 0x129   : > { %v2586_v15 = vmov (!%p2066_p2), 0.0  }
 0x12a   : > { %825 = sbr.rel (%p2066_p2) target bundleno = 305 (0x131), region = 72  ;;  %827 = vst.msk [vmem:[#allocation2 + $0xd8] sm:$0xff] (!%p2066_p2), %vm763_vm1, %v2586_v15  ;;  %828 = vst.msk [vmem:[#allocation2 + $0xe0] sm:$0xff] (!%p2066_p2), %vm763_vm1, %v2586_v15 }
 0x12b   : > { %829 = vst.msk [vmem:[#allocation2 + $0xe8] sm:$0x3] (!%p2066_p2), %vm766_vm2, %v2586_v15 }
 0x131 PF: > { %v874_v41 = vld [vmem:[#allocation2 + $0x32] sm:$0xff]  ;;  %v875_v42 = vld [vmem:[#allocation2 + $0x3a] sm:$0xff]  ;;  %v876_v46 = vld [vmem:[#allocation2 + $0x4a] sm:$0xff]  ;;  %s2587_s23 = smov 16   ;;  %s2588_s24 = smov 8   ;;  %vm1138_vm3 = vcmask 1043456  }
 0x132   : > { %v854_v43 = vld [vmem:[#allocation2 + $0x31] sm:$0xff]  ;;  %v2392_v44 = vpack.i.bf16 %v875_v42, %v874_v41  ;;  %v855_v45 = vld [vmem:[#allocation2 + $0x39] sm:$0xff]  ;;  %v856_v49 = vld [vmem:[#allocation2 + $0x49] sm:$0xff]  ;;  %vm1070_vm4 = vcmask 130048   ;;  %vm1113_vm5 = vcmask 195584   ;;  %s2122_s29 = sshll.u32 %s2566_s20, 4 }
 0x133   : > { %v877_v47 = vld [vmem:[#allocation2 + $0x52] sm:$0xff]  ;;  %v2382_v48 = vpack.i.bf16 %v855_v45, %v854_v43  ;;  %v861_v54 = vld [vmem:[#allocation2 + $0x81] sm:$0xff]  ;;  %v859_v56 = vld [vmem:[#allocation2 + $0x69] sm:$0xff]  ;;  %s2118_s13 = sshll.u32 %s2570_s21, 5  ;;  %s1921_s14 = sshll.u32 %s2878_s22, 4  ;;  %s3227_s14 = int_to_ptr.vmem [resolvable:$true] %s1921_s14 }
 0x134   : > { %v857_v50 = vld [vmem:[#allocation2 + $0x51] sm:$0xff]  ;;  %2393 = vrot.lane.b32.xlu1 %v2392_v44, %s2587_s23  ;;  %v2397_v51 = vpack.i.bf16 %v877_v47, %v876_v46  ;;  %v860_v53 = vld [vmem:[#allocation2 + $0x79] sm:$0xff]  ;;  %v858_v55 = vld [vmem:[#allocation2 + $0x61] sm:$0xff]  ;;  %s1918_s20 = sadd.s32 %s2122_s29, %s2118_s13  ;;  %s3325_s17 = sld [smem:[#allocation17_spill]] }
 0x135   : > { %2383 = vrot.lane.b32.xlu0 %v2382_v48, %s2588_s24  ;;  %v2387_v52 = vpack.i.bf16 %v857_v50, %v856_v49  ;;  %v2407_v57 = vpack.i.bf16 %v861_v54, %v860_v53  ;;  %v2402_v58 = vpack.i.bf16 %v859_v56, %v858_v55  ;;  %v880_v59 = vld [vmem:[#allocation2 + $0x7a] sm:$0xff]  ;;  %v881_v60 = vld [vmem:[#allocation2 + $0x82] sm:$0xff]  ;;  %v879_v62 = vld [vmem:[#allocation2 + $0x6a] sm:$0xff]  ;;  %s2119_s21 = sshll.u32 %s1918_s20, 7  ;;  %s2488_s16 = scalar_lea.vmem %s3227_s14, 2048 }
 0x136   : > { %v878_v61 = vld [vmem:[#allocation2 + $0x62] sm:$0xff]  ;;  %v2417_v63 = vpack.i.bf16 %v881_v60, %v880_v59  ;;  %v862_v1 = vld [vmem:[#allocation2 + $0x91] sm:$0xff]  ;;  %v863_v4 = vld [vmem:[#allocation2 + $0x99] sm:$0xff]  ;;  %p2489_p4 = scmp.ne.s32.totalorder %s3227_s14, %s2488_s16  ;;  %s2589_s25 = smov [#allocation4]  }
 0x137   : > { %v2412_v0 = vpack.i.bf16 %v879_v62, %v878_v61  ;;  %v850_v11 = vld [vmem:[#allocation2 + $0x1] sm:$0xff]  ;;  %v851_v12 = vld [vmem:[#allocation2 + $0x9] sm:$0xff]  ;;  %v2427_v16 = vpack.i.bf16 %v863_v4, %v862_v1  ;;  %v865_v19 = vld [vmem:[#allocation2 + $0xb1] sm:$0xff]  ;;  %s2492_s15 = sshll.u32 %s2589_s25, 4  ;;  %s2493_s15 = int_to_ptr.vmem [resolvable:$false] %s2492_s15 }
 0x138   : > { %2398 = vrot.lane.b32.xlu1 %v2397_v51, %s2587_s23  ;;  %v2482_v14 = vld [vmem:[%s3293_s5] sm:$0xff]   ;;  %v2422_v17 = vpack.i.bf16 %v851_v12, %v850_v11  ;;  %v864_v18 = vld [vmem:[#allocation2 + $0xa9] sm:$0xff]  ;;  %v2483_v20 = vld [vmem:[%s3293_s5 + $0x8] ss:$0 sps:$4 sm:$0xff]   ;;  %p2490_p5 = pnand %p2489_p4, %p2702_p3  ;;  %s2494_s27 = scalar_lea.vmem %s2493_s15, 4096 }
 0x139   : > { %2388 = vrot.lane.b32.xlu0 %v2387_v52, %s2588_s24  ;;  %2276 = vmatprep.subr.bf16.mxu1 %v2482_v14  ;;  %v852_v21 = vld [vmem:[#allocation2 + $0x19] sm:$0xff]  ;;  %v853_v22 = vld [vmem:[#allocation2 + $0x21] sm:$0xff]  ;;  %v1140_v23 = vsel %vm1138_vm3, %v2483_v20, 0  ;;  %v2437_v24 = vpack.i.bf16 %v865_v19, %v864_v18  ;;  %v2908_v25 = vld [vmem:[%s3293_s5 + $0xc] sm:$0xff]   ;;  %p2495_p7 = scmp.lt.s32.totalorder %s3227_s14, %s2493_s15  ;;  %p2496_p9 = scmp.lt.s32.totalorder %s2494_s27, %s2488_s16 }
 0x13a   : > { %2278 = vmatpush3.bf16.msra.mxu1 %v2482_v14  ;;  %2198 = vmatprep.subr.bf16.mxu0 %v2482_v14  ;;  %v2432_v26 = vpack.i.bf16 %v853_v22, %v852_v21  ;;  %v882_v27 = vld [vmem:[#allocation2 + $0x92] sm:$0xff]  ;;  %v883_v28 = vld [vmem:[#allocation2 + $0x9a] sm:$0xff]  ;;  %v870_v29 = vld [vmem:[#allocation2 + $0x2] sm:$0xff]  ;;  %s3326_s28 = smov %s3325_s17  ;;  %s3223_s19 = scalar_lea.hbm %s3325_s17, %s2119_s21 }
 0x13b   : > { %2281 = vmatprep.subr.msk.bf16.mxu1 %vm1138_vm3, %v2483_v20  ;;  %2199 = vmatpush3.bf16.msra.mxu0 %v2482_v14  ;;  %v871_v30 = vld [vmem:[#allocation2 + $0xa] sm:$0xff]  ;;  %v2916_v31 = vld [vmem:[%s3293_s5 + $0x18] sm:$0xff]   ;;  %v2447_v32 = vpack.i.bf16 %v883_v28, %v882_v27  ;;  %v873_v37 = vld [vmem:[#allocation2 + $0x22] sm:$0xff]  ;;  %p2491_p6 = pneg %p2490_p5  ;;  %p2497_p10 = por %p2496_p9, %p2495_p7 }
 0x13c   : > { %2408 = vrot.lane.b32.xlu1 %v2407_v57, %s2588_s24  ;;  %2280 = vmatprep.subr.msk.bf16.mxu0 %vm1138_vm3, %v2483_v20  ;;  %v2442_v33 = vpack.i.bf16 %v871_v30, %v870_v29  ;;  %v884_v34 = vld [vmem:[#allocation2 + $0xaa] sm:$0xff]  ;;  %v885_v35 = vld [vmem:[#allocation2 + $0xb2] sm:$0xff]  ;;  %v872_v36 = vld [vmem:[#allocation2 + $0x1a] sm:$0xff] }
 0x13d   : > { %2403 = vrot.lane.b32.xlu0 %v2402_v58, %s2588_s24  ;;  %v2457_v38 = vpack.i.bf16 %v885_v35, %v884_v34  ;;  %v2452_v39 = vpack.i.bf16 %v873_v37, %v872_v36  ;;  %v886_v40 = vld [vmem:[#allocation2 + $0xc2] sm:$0xff]  ;;  %v887_v13 = vld [vmem:[#allocation2 + $0xca] sm:$0xff]  ;;  %v888_v44 = vld [vmem:[#allocation2 + $0xda] sm:$0xff]  ;;  %p2498_p11 = pnand %p2497_p10, %p2491_p6 }
 0x13e   : > { %2279 = vmatpush3.bf16.msra.mxu1 %v1140_v23  ;;  %v866_v15 = vld [vmem:[#allocation2 + $0xc1] sm:$0xff]  ;;  %v867_v41 = vld [vmem:[#allocation2 + $0xc9] sm:$0xff]  ;;  %v2467_v42 = vpack.i.bf16 %v887_v13, %v886_v40  ;;  %v868_v46 = vld [vmem:[#allocation2 + $0xd9] sm:$0xff] }
 0x13f   : > { %2218 = vmatprep.subr.bf16.mxu1 %v2908_v25  ;;  %2201 = vmatpush3.bf16.msra.mxu0 %v1140_v23  ;;  %v2462_v43 = vpack.i.bf16 %v867_v41, %v866_v15  ;;  %v889_v45 = vld [vmem:[#allocation2 + $0xe2] sm:$0xff]  ;;  %v834_v54 = vld [vmem:[#allocation2 + $0x30] sm:$0xff]  ;;  %v835_v55 = vld [vmem:[#allocation2 + $0x38] sm:$0xff] }
 0x140   : > { %2418 = vrot.lane.b32.xlu1 %v2417_v63, %s2587_s23  ;;  %2238 = vmatprep.subr.bf16.mxu0 %v2916_v31  ;;  %v869_v47 = vld [vmem:[#allocation2 + $0xe1] sm:$0xff]  ;;  %v2477_v48 = vpack.i.bf16 %v889_v45, %v888_v44  ;;  %v837_v1 = vld [vmem:[#allocation2 + $0x50] sm:$0xff]  ;;  %v840_v28 = vld [vmem:[#allocation2 + $0x78] sm:$0xff] }
 0x141   : > { %2413 = vrot.lane.b32.xlu0 %v2412_v0, %s2587_s23  ;;  %v2472_v49 = vpack.i.bf16 %v869_v47, %v868_v46  ;;  %v836_v0 = vld [vmem:[#allocation2 + $0x48] sm:$0xff]  ;;  %v2485_v23 = vld [vmem:[%s3293_s5 + $0x14] ss:$0 sps:$4 sm:$0xff]   ;;  %v841_v29 = vld [vmem:[#allocation2 + $0x80] sm:$0xff] }
 0x142   : > { %v839_v34 = vld [vmem:[#allocation2 + $0x68] sm:$0xff] }
 0x144   : > { %2428 = vrot.lane.b32.xlu1 %v2427_v16, %s2588_s24 }
 0x145   : > { %2423 = vrot.lane.b32.xlu0 %v2422_v17, %s2588_s24 }
 0x148   : > { %2438 = vrot.lane.b32.xlu1 %v2437_v24, %s2588_s24 }
 0x149   : > { %2433 = vrot.lane.b32.xlu0 %v2432_v26, %s2588_s24 }
 0x14c   : > { %2448 = vrot.lane.b32.xlu1 %v2447_v32, %s2587_s23 }
 0x14d   : > { %2443 = vrot.lane.b32.xlu0 %v2442_v33, %s2587_s23  ;;  %v838_v33 = vld [vmem:[#allocation2 + $0x60] sm:$0xff] }
 0x150   : > { %2458 = vrot.lane.b32.xlu1 %v2457_v38, %s2587_s23 }
 0x151   : > { %2453 = vrot.lane.b32.xlu0 %v2452_v39, %s2587_s23  ;;  %v1288_v39 = vsel %vm1138_vm3, %v2485_v23, 0 }
 0x154   : > { %2468 = vrot.lane.b32.xlu1 %v2467_v42, %s2587_s23 }
 0x155   : > { %2463 = vrot.lane.b32.xlu0 %v2462_v43, %s2588_s24 }
 0x158   : > { %2478 = vrot.lane.b32.xlu1 %v2477_v48, %s2587_s23  ;;  %s3327_s23 = sand.u32 1, %s2558_s18  }
 0x159   : > { %2473 = vrot.lane.b32.xlu0 %v2472_v49, %s2588_s24  ;;  %s3235_s12 = scalar_lea.sflag [#allocation5], %s3327_s23 }
 0x1a6   : > { %v2394_v50 = vpop.permute.xlu1 %2393 }
 0x1a7   : > { %v2396_v51 = vunpack.i.h.bf16 %v2394_v50  ;;  %v2395_v52 = vunpack.i.l.bf16 %v2394_v50  ;;  %v2384_v53 = vpop.permute.xlu0 %2383 }
 0x1a8   : > { %v2386_v56 = vunpack.i.h.bf16 %v2384_v53  ;;  %v2385_v57 = vunpack.i.l.bf16 %v2384_v53 }
 0x1aa   : > { %v1054_v58 = vsel %vm763_vm1, %v834_v54, %v2385_v57  ;;  %v1055_v59 = vsel %vm763_vm1, %v835_v55, %v2386_v56  ;;  %v2399_v60 = vpop.permute.xlu1 %2398  ;;  %v842_v54 = vld [vmem:[#allocation2 + $0x90] sm:$0xff]  ;;  %v843_v55 = vld [vmem:[#allocation2 + $0x98] sm:$0xff] }
 0x1ab   : > { %v2401_v61 = vunpack.i.h.bf16 %v2399_v60  ;;  %v2400_v62 = vunpack.i.l.bf16 %v2399_v60  ;;  %v2389_v63 = vpop.permute.xlu0 %2388  ;;  %v1075_v4 = vsel %vm1070_vm4, %v1054_v58, %v2395_v52  ;;  %v1076_v11 = vsel %vm1070_vm4, %v1055_v59, %v2396_v51  ;;  %v830_v59 = vld [vmem:[#allocation2] sm:$0xff]  ;;  %v831_v60 = vld [vmem:[#allocation2 + $0x8] sm:$0xff] }
 0x1ac   : > { %v2391_v12 = vunpack.i.h.bf16 %v2389_v63  ;;  %v2390_v14 = vunpack.i.l.bf16 %v2389_v63  ;;  %v2933_v16 = vpack.c.bf16 %v1076_v11, %v1075_v4 }
 0x1ae   : > { %v1056_v17 = vsel %vm763_vm1, %v836_v0, %v2390_v14  ;;  %v1057_v18 = vsel %vm763_vm1, %v837_v1, %v2391_v12  ;;  %2206 = vmatprep.mubr.msk.bf16.mxu1 %vm1113_vm5, %v2933_v16  ;;  %v2409_v19 = vpop.permute.xlu1 %2408 }
 0x1af   : > { %v1077_v20 = vsel %vm1070_vm4, %v1056_v17, %v2400_v62  ;;  %v1078_v21 = vsel %vm1070_vm4, %v1057_v18, %v2401_v61  ;;  %v2404_v22 = vpop.permute.xlu0 %2403  ;;  %v2411_v26 = vunpack.i.h.bf16 %v2409_v19  ;;  %v2410_v27 = vunpack.i.l.bf16 %v2409_v19 }
 0x1b0   : > { %v2944_v24 = vpack.c.bf16 %v1078_v21, %v1077_v20  ;;  %v2406_v30 = vunpack.i.h.bf16 %v2404_v22  ;;  %v2405_v32 = vunpack.i.l.bf16 %v2404_v22  ;;  %v844_v20 = vld [vmem:[#allocation2 + $0xa8] sm:$0xff]  ;;  %v845_v21 = vld [vmem:[#allocation2 + $0xb0] sm:$0xff] }
 0x1b1   : > { %v1060_v40 = vsel %vm763_vm1, %v840_v28, %v2410_v27  ;;  %v1061_v13 = vsel %vm763_vm1, %v841_v29, %v2411_v26  ;;  %v832_v28 = vld [vmem:[#allocation2 + $0x18] sm:$0xff]  ;;  %v833_v29 = vld [vmem:[#allocation2 + $0x20] sm:$0xff] }
 0x1b2   : > { %2207 = vmatmul.mubr.msk.bf16.vlgmr.msra.gmra.mrb[0].mxu1 %vm1113_vm5, %v2944_v24  ;;  %v2419_v35 = vpop.permute.xlu1 %2418  ;;  %v1058_v42 = vsel %vm763_vm1, %v838_v33, %v2405_v32  ;;  %v1059_v43 = vsel %vm763_vm1, %v839_v34, %v2406_v30 }
 0x1b3   : > { %v2421_v36 = vunpack.i.h.bf16 %v2419_v35  ;;  %v2420_v37 = vunpack.i.l.bf16 %v2419_v35  ;;  %v2414_v38 = vpop.permute.xlu0 %2413  ;;  %2219 = vmatpush3.bf16.msra.mxu1 %v2908_v25 }
 0x1b4   : > { %v2416_v15 = vunpack.i.h.bf16 %v2414_v38  ;;  %v2415_v41 = vunpack.i.l.bf16 %v2414_v38  ;;  %2282 = vmatprep.subr.msk.bf16.mxu1 %vm1138_vm3, %v2485_v23 }
 0x1b5   : > { %v1081_v44 = vsel %vm1070_vm4, %v1060_v40, %v2420_v37  ;;  %v1082_v45 = vsel %vm1070_vm4, %v1061_v13, %v2421_v36 }
 0x1b6   : > { %v2957_v46 = vpack.c.bf16 %v1082_v45, %v1081_v44  ;;  %v1079_v25 = vsel %vm1070_vm4, %v1058_v42, %v2415_v41  ;;  %v1080_v47 = vsel %vm1070_vm4, %v1059_v43, %v2416_v15  ;;  %v2429_v48 = vpop.permute.xlu1 %2428 }
 0x1b7   : > { %v2961_v49 = vpack.c.bf16 %v1080_v47, %v1079_v25  ;;  %v2424_v50 = vpop.permute.xlu0 %2423  ;;  %2221 = vmatpush3.bf16.msra.mxu1 %v1288_v39  ;;  %v2431_v51 = vunpack.i.h.bf16 %v2429_v48  ;;  %v2430_v52 = vunpack.i.l.bf16 %v2429_v48 }
 0x1b8   : > { %v2426_v56 = vunpack.i.h.bf16 %v2424_v50  ;;  %v2425_v57 = vunpack.i.l.bf16 %v2424_v50  ;;  %v2487_v50 = vld [vmem:[%s3293_s5 + $0x20] ss:$0 sps:$4 sm:$0xff]  }
 0x1b9   : > { %2210 = vmatprep.mubr.msk.bf16.mxu1 %vm1113_vm5, %v2961_v49  ;;  %v1062_v61 = vsel %vm763_vm1, %v842_v54, %v2430_v52  ;;  %v1063_v62 = vsel %vm763_vm1, %v843_v55, %v2431_v51  ;;  %v1452_v51 = vsel %vm1138_vm3, %v2487_v50, 0  ;;  %v846_v55 = vld [vmem:[#allocation2 + $0xc0] sm:$0xff] }
 0x1ba   : > { %2211 = vmatmul.mubr.msk.bf16.gmra.mrb[4].mxu1 %vm1113_vm5, %v2957_v46  ;;  %v2439_v53 = vpop.permute.xlu1 %2438  ;;  %v1050_v0 = vsel %vm763_vm1, %v830_v59, %v2425_v57  ;;  %v1051_v1 = vsel %vm763_vm1, %v831_v60, %v2426_v56  ;;  %v847_v56 = vld [vmem:[#allocation2 + $0xc8] sm:$0xff] }
 0x1bb   : > { %v2434_v58 = vpop.permute.xlu0 %2433  ;;  %v2441_v14 = vunpack.i.h.bf16 %v2439_v53  ;;  %v2440_v17 = vunpack.i.l.bf16 %v2439_v53 }
 0x1bc   : > { %v2436_v22 = vunpack.i.h.bf16 %v2434_v58  ;;  %v2435_v23 = vunpack.i.l.bf16 %v2434_v58 }
 0x1bd   : > { %v1064_v39 = vsel %vm763_vm1, %v844_v20, %v2440_v17  ;;  %v1065_v40 = vsel %vm763_vm1, %v845_v21, %v2441_v14  ;;  %v1669_v20 = vld [vmem:[%s3296_s8] sm:$0xf] }
 0x1be   : > { %v2449_v63 = vpop.permute.xlu1 %2448  ;;  %v1052_v41 = vsel %vm763_vm1, %v832_v28, %v2435_v23  ;;  %v1053_v42 = vsel %vm763_vm1, %v833_v29, %v2436_v22  ;;  %2284 = vmatprep.subr.msk.bf16.mxu1 %vm1138_vm3, %v1669_v20  ;;  %v1695_v21 = vsel %vm1138_vm3, %v1669_v20, 0 }
 0x1bf   : > { %v2451_v4 = vunpack.i.h.bf16 %v2449_v63  ;;  %v2450_v11 = vunpack.i.l.bf16 %v2449_v63  ;;  %v2444_v12 = vpop.permute.xlu0 %2443 }
 0x1c0   : > { %v2446_v18 = vunpack.i.h.bf16 %v2444_v12  ;;  %v2445_v19 = vunpack.i.l.bf16 %v2444_v12 }
 0x1c1   : > { %v1083_v26 = vsel %vm1070_vm4, %v1062_v61, %v2450_v11  ;;  %v1084_v27 = vsel %vm1070_vm4, %v1063_v62, %v2451_v4 }
 0x1c2   : > { %v2973_v30 = vpack.c.bf16 %v1084_v27, %v1083_v26  ;;  %v2459_v32 = vpop.permute.xlu1 %2458  ;;  %v1071_v33 = vsel %vm1070_vm4, %v1050_v0, %v2445_v19  ;;  %v1072_v34 = vsel %vm1070_vm4, %v1051_v1, %v2446_v18  ;;  %v848_v0 = vld [vmem:[#allocation2 + $0xd8] sm:$0xff]  ;;  %v849_v1 = vld [vmem:[#allocation2 + $0xe0] sm:$0xff] }
 0x1c3   : > { %v2461_v35 = vunpack.i.h.bf16 %v2459_v32  ;;  %v2460_v36 = vunpack.i.l.bf16 %v2459_v32  ;;  %v2454_v37 = vpop.permute.xlu0 %2453  ;;  %v1091_v38 = vpack.c.bf16 %v1072_v34, %v1071_v33 }
 0x1c4   : > { %v2456_v13 = vunpack.i.h.bf16 %v2454_v37  ;;  %v2455_v15 = vunpack.i.l.bf16 %v2454_v37  ;;  %2214 = vmatprep.mubr.msk.bf16.mxu1 %vm1113_vm5, %v2973_v30 }
 0x1c5   : > { %v1085_v43 = vsel %vm1070_vm4, %v1064_v39, %v2460_v36  ;;  %v1086_v44 = vsel %vm1070_vm4, %v1065_v40, %v2461_v35  ;;  %2202 = vmatprep.mubr.msk.bf16.mxu0 %vm1113_vm5, %v1091_v38 }
 0x1c6   : > { %v1098_v45 = vpack.c.bf16 %v1086_v44, %v1085_v43  ;;  %v1073_v25 = vsel %vm1070_vm4, %v1052_v41, %v2455_v15  ;;  %v1074_v47 = vsel %vm1070_vm4, %v1053_v42, %v2456_v13  ;;  %v2469_v54 = vpop.permute.xlu1 %2468 }
 0x1c7   : > { %v1092_v48 = vpack.c.bf16 %v1074_v47, %v1073_v25  ;;  %v2464_v52 = vpop.permute.xlu0 %2463  ;;  %v2471_v57 = vunpack.i.h.bf16 %v2469_v54  ;;  %v2470_v58 = vunpack.i.l.bf16 %v2469_v54 }
 0x1c8   : > { %2215 = vmatmul.mubr.msk.bf16.gmra.mrb[8].mxu1 %vm1113_vm5, %v1098_v45  ;;  %v2465_v53 = vunpack.i.l.bf16 %v2464_v52 }
 0x1c9   : > { %2203 = vmatmul.mubr.msk.bf16.vlgmr.msra.gmra.mrb[20].mxu0 %vm1113_vm5, %v1092_v48  ;;  %2222 = vmatprep.mubr.msk.bf16.mxu1 %vm1113_vm5, %v1092_v48 }
 0x1ca   : > { %2239 = vmatpush3.bf16.msra.mxu0 %v2916_v31  ;;  %2242 = vmatprep.mubr.msk.bf16.mxu0 %vm1113_vm5, %v2933_v16  ;;  %v2466_v31 = vunpack.i.h.bf16 %v2464_v52  ;;  %v2479_v63 = vpop.permute.xlu1 %2478 }
 0x1cb   : > { %2283 = vmatprep.subr.msk.bf16.mxu0 %vm1138_vm3, %v2487_v50  ;;  %v2474_v60 = vpop.permute.xlu0 %2473  ;;  %v2481_v11 = vunpack.i.h.bf16 %v2479_v63  ;;  %v2480_v12 = vunpack.i.l.bf16 %v2479_v63 }
 0x1cc   : > { %v1067_v59 = vsel %vm763_vm1, %v847_v56, %v2466_v31  ;;  %v2476_v62 = vunpack.i.h.bf16 %v2474_v60 }
 0x1cd   : > { %v1088_v61 = vsel %vm1070_vm4, %v1067_v59, %v2471_v57 }
 0x1ce   : > { %2241 = vmatpush3.bf16.msra.mxu0 %v1452_v51  ;;  %v1069_v17 = vsel %vm763_vm1, %v849_v1, %v2476_v62 }
 0x1cf   : > { %v1090_v18 = vsel %vm1070_vm4, %v1069_v17, %v2481_v11 }
 0x1d0   : > { %2223 = vmatmul.mubr.msk.bf16.vlgmr.msra.gmra.mrb[12].mxu1 %vm1113_vm5, %v2933_v16  ;;  %v1066_v16 = vsel %vm763_vm1, %v846_v55, %v2465_v53 }
 0x1d1   : > { %2243 = vmatmul.mubr.msk.bf16.vlgmr.msra.gmra.mrb[24].mxu0 %vm1113_vm5, %v2944_v24  ;;  %2226 = vmatprep.mubr.msk.bf16.mxu1 %vm1113_vm5, %v2944_v24  ;;  %v1087_v24 = vsel %vm1070_vm4, %v1066_v16, %v2470_v58 }
 0x1d2   : > { %2246 = vmatprep.mubr.msk.bf16.mxu0 %vm1113_vm5, %v2961_v49  ;;  %v1099_v4 = vpack.c.bf16 %v1088_v61, %v1087_v24  ;;  %2259 = vmatpush3.bf16.msra.mxu1 %v1695_v21 }
 0x1d8   : > { %2227 = vmatmul.mubr.msk.bf16.gmra.mrb[16].mxu1 %vm1113_vm5, %v2961_v49  ;;  %v2475_v49 = vunpack.i.l.bf16 %v2474_v60 }
 0x1d9   : > { %2247 = vmatmul.mubr.msk.bf16.gmra.mrb[28].mxu0 %vm1113_vm5, %v2957_v46  ;;  %2230 = vmatprep.mubr.msk.bf16.mxu1 %vm1113_vm5, %v2957_v46 }
 0x1da   : > { %2250 = vmatprep.mubr.msk.bf16.mxu0 %vm1113_vm5, %v2973_v30  ;;  %v1068_v14 = vsel %vm763_vm1, %v848_v0, %v2475_v49 }
 0x1db   : > { %v1089_v46 = vsel %vm1070_vm4, %v1068_v14, %v2480_v12 }
 0x1dc   : > { %v1100_v19 = vpack.c.bf16 %v1090_v18, %v1089_v46 }
 0x1e0   : > { %2231 = vmatmul.mubr.msk.bf16.gmra.mrb[20].mxu1 %vm1113_vm5, %v2973_v30 }
 0x1e1   : > { %2251 = vmatmul.mubr.msk.bf16.gmra.mrb[32].mxu0 %vm1113_vm5, %v1098_v45  ;;  %2234 = vmatprep.mubr.msk.bf16.mxu1 %vm1113_vm5, %v1098_v45 }
 0x1e2   : > { %2254 = vmatprep.mubr.msk.bf16.mxu0 %vm1113_vm5, %v1099_v4 }
 0x1e8   : > { %2235 = vmatmul.mubr.msk.bf16.gmra.mrb[24].mxu1 %vm1113_vm5, %v1099_v4 }
 0x1e9   : > { %2255 = vmatmul.mubr.msk.bf16.gmra.mrb[36].mxu0 %vm1113_vm5, %v1100_v19 }
 0x285   : > { %v2208_v22 = vpop.f32.mrb[0].mxu1 }
 0x286   : > { %1245 = vst.msk [vmem:[#allocation3 + $0x30] sm:$0xff] %vm763_vm1, %v2208_v22  ;;  %v1192_v23 = vpop.f32.mrb[1].mxu1 }
 0x287   : > { %1243 = vst.msk [vmem:[#allocation3 + $0x20] sm:$0xff] %vm763_vm1, %v1192_v23  ;;  %v2209_v26 = vpop.f32.mrb[2].mxu1 }
 0x288   : > { %1246 = vst.msk [vmem:[#allocation3 + $0x38] sm:$0xff] %vm763_vm1, %v2209_v26  ;;  %v1195_v27 = vpop.f32.mrb[3].mxu1 }
 0x289   : > { %1244 = vst.msk [vmem:[#allocation3 + $0x28] sm:$0xff] %vm763_vm1, %v1195_v27 }
 0x28d   : > { %v2212_v28 = vpop.f32.mrb[4].mxu1  ;;  %v1261_v55 = vld [vmem:[#allocation3 + $0x30] sm:$0xff] }
 0x28e   : > { %1249 = vst.msk [vmem:[#allocation3 + $0x50] sm:$0xff] %vm763_vm1, %v2212_v28  ;;  %v1208_v29 = vpop.f32.mrb[5].mxu1  ;;  %v1259_v16 = vld [vmem:[#allocation3 + $0x20] sm:$0xff] }
 0x28f   : > { %1247 = vst.msk [vmem:[#allocation3 + $0x40] sm:$0xff] %vm763_vm1, %v1208_v29  ;;  %v2213_v30 = vpop.f32.mrb[6].mxu1  ;;  %v1262_v61 = vld [vmem:[#allocation3 + $0x38] sm:$0xff] }
 0x290   : > { %1250 = vst.msk [vmem:[#allocation3 + $0x58] sm:$0xff] %vm763_vm1, %v2213_v30  ;;  %v1211_v32 = vpop.f32.mrb[7].mxu1  ;;  %v1260_v1 = vld [vmem:[#allocation3 + $0x28] sm:$0xff] }
 0x291   : > { %1248 = vst.msk [vmem:[#allocation3 + $0x48] sm:$0xff] %vm763_vm1, %v1211_v32 }
 0x295   : > { %v1265_v22 = vld [vmem:[#allocation3 + $0x50] sm:$0xff] }
 0x296   : > { %v1263_v28 = vld [vmem:[#allocation3 + $0x40] sm:$0xff] }
 0x29b   : > { %v2216_v33 = vpop.f32.mrb[8].mxu1 }
 0x29c   : > { %v2204_v34 = vpop.f32.mrb[20].mxu0  ;;  %1253 = vst.msk [vmem:[#allocation3 + $0x70] sm:$0xff] %vm763_vm1, %v2216_v33  ;;  %v1224_v35 = vpop.f32.mrb[9].mxu1 }
 0x29d   : > { %1241 = vst.msk [vmem:[#allocation3 + $0x10] sm:$0xff] %vm763_vm1, %v2204_v34  ;;  %v1176_v36 = vpop.f32.mrb[21].mxu0  ;;  %1251 = vst.msk [vmem:[#allocation3 + $0x60] sm:$0xff] %vm763_vm1, %v1224_v35  ;;  %v2217_v37 = vpop.f32.mrb[10].mxu1  ;;  %v1266_v34 = vld [vmem:[#allocation3 + $0x58] sm:$0xff] }
 0x29e   : > { %1239 = vst.msk [vmem:[#allocation3] sm:$0xff] %vm763_vm1, %v1176_v36  ;;  %v2205_v38 = vpop.f32.mrb[22].mxu0  ;;  %1254 = vst.msk [vmem:[#allocation3 + $0x78] sm:$0xff] %vm763_vm1, %v2217_v37  ;;  %v1227_v39 = vpop.f32.mrb[11].mxu1 }
 0x29f   : > { %1242 = vst.msk [vmem:[#allocation3 + $0x18] sm:$0xff] %vm763_vm1, %v2205_v38  ;;  %v1179_v40 = vpop.f32.mrb[23].mxu0  ;;  %1252 = vst.msk [vmem:[#allocation3 + $0x68] sm:$0xff] %vm763_vm1, %v1227_v39 }
 0x2a0   : > { %1240 = vst.msk [vmem:[#allocation3 + $0x8] sm:$0xff] %vm763_vm1, %v1179_v40  ;;  %v1264_v40 = vld [vmem:[#allocation3 + $0x48] sm:$0xff] }
 0x2a3   : > { %v2224_v13 = vpop.f32.mrb[12].mxu1 }
 0x2a4   : > { %v1257_v15 = vld [vmem:[#allocation3 + $0x10] sm:$0xff]  ;;  %v2244_v41 = vpop.f32.mrb[24].mxu0  ;;  %v1324_v42 = vpop.f32.mrb[13].mxu1 }
 0x2a5   : > { %v1389_v43 = vadd.f32 %v2224_v13, %v1257_v15  ;;  %v1255_v44 = vld [vmem:[#allocation3] sm:$0xff]  ;;  %v1488_v45 = vpop.f32.mrb[25].mxu0  ;;  %v2225_v25 = vpop.f32.mrb[14].mxu1  ;;  %v3067_v15 = vld [vmem:[%s3294_s6] ss:$0 sm:$0xff] }
 0x2a6   : > { %v1387_v47 = vadd.f32 %v1324_v42, %v1255_v44  ;;  %v1258_v48 = vld [vmem:[#allocation3 + $0x18] sm:$0xff]  ;;  %v2245_v50 = vpop.f32.mrb[26].mxu0  ;;  %v1327_v51 = vpop.f32.mrb[15].mxu1 }
 0x2a7   : > { %1405 = vst.msk [vmem:[#allocation3 + $0x10] sm:$0xff] %vm763_vm1, %v1389_v43  ;;  %v1390_v52 = vadd.f32 %v2225_v25, %v1258_v48  ;;  %v1256_v31 = vld [vmem:[#allocation3 + $0x8] sm:$0xff]  ;;  %v1491_v53 = vpop.f32.mrb[27].mxu0 }
 0x2a8   : > { %1403 = vst.msk [vmem:[#allocation3] sm:$0xff] %vm763_vm1, %v1387_v47  ;;  %v1388_v54 = vadd.f32 %v1327_v51, %v1256_v31  ;;  %v3077_v51 = vld [vmem:[%s3295_s7] ss:$0 sm:$0xff] }
 0x2a9   : > { %1406 = vst.msk [vmem:[#allocation3 + $0x18] sm:$0xff] %vm763_vm1, %v1390_v52 }
 0x2aa   : > { %1404 = vst.msk [vmem:[#allocation3 + $0x8] sm:$0xff] %vm763_vm1, %v1388_v54  ;;  %v1269_v54 = vld [vmem:[#allocation3 + $0x70] sm:$0xff] }
 0x2ab   : > { %v2228_v56 = vpop.f32.mrb[16].mxu1 }
 0x2ac   : > { %v1393_v57 = vadd.f32 %v2228_v56, %v1261_v55  ;;  %v2248_v58 = vpop.f32.mrb[28].mxu0  ;;  %v1340_v59 = vpop.f32.mrb[17].mxu1 }
 0x2ad   : > { %v1391_v60 = vadd.f32 %v1340_v59, %v1259_v16  ;;  %v1504_v24 = vpop.f32.mrb[29].mxu0  ;;  %v2229_v62 = vpop.f32.mrb[18].mxu1  ;;  %v1267_v16 = vld [vmem:[#allocation3 + $0x60] sm:$0xff] }
 0x2ae   : > { %v1421_v49 = vld [vmem:[#allocation3 + $0x10] sm:$0xff]  ;;  %1409 = vst.msk [vmem:[#allocation3 + $0x30] sm:$0xff] %vm763_vm1, %v1393_v57  ;;  %v1394_v63 = vadd.f32 %v2229_v62, %v1262_v61  ;;  %v2249_v0 = vpop.f32.mrb[30].mxu0  ;;  %v1343_v4 = vpop.f32.mrb[19].mxu1 }
 0x2af   : > { %v1553_v11 = vadd.f32 %v2244_v41, %v1421_v49  ;;  %v1419_v12 = vld [vmem:[#allocation3] sm:$0xff]  ;;  %1407 = vst.msk [vmem:[#allocation3 + $0x20] sm:$0xff] %vm763_vm1, %v1391_v60  ;;  %v1392_v14 = vadd.f32 %v1343_v4, %v1260_v1  ;;  %v1507_v17 = vpop.f32.mrb[31].mxu0 }
 0x2b0   : > { %v1551_v46 = vadd.f32 %v1488_v45, %v1419_v12  ;;  %v1422_v18 = vld [vmem:[#allocation3 + $0x18] sm:$0xff]  ;;  %1410 = vst.msk [vmem:[#allocation3 + $0x38] sm:$0xff] %vm763_vm1, %v1394_v63 }
 0x2b1   : > { %1569 = vst.msk [vmem:[#allocation3 + $0x10] sm:$0xff] %vm763_vm1, %v1553_v11  ;;  %v1554_v19 = vadd.f32 %v2245_v50, %v1422_v18  ;;  %v1420_v20 = vld [vmem:[#allocation3 + $0x8] sm:$0xff]  ;;  %1408 = vst.msk [vmem:[#allocation3 + $0x28] sm:$0xff] %vm763_vm1, %v1392_v14  ;;  %v1270_v63 = vld [vmem:[#allocation3 + $0x78] sm:$0xff] }
 0x2b2   : > { %1567 = vst.msk [vmem:[#allocation3] sm:$0xff] %vm763_vm1, %v1551_v46  ;;  %v1552_v21 = vadd.f32 %v1491_v53, %v1420_v20  ;;  %v1268_v46 = vld [vmem:[#allocation3 + $0x68] sm:$0xff] }
 0x2b3   : > { %1570 = vst.msk [vmem:[#allocation3 + $0x18] sm:$0xff] %vm763_vm1, %v1554_v19  ;;  %v2232_v23 = vpop.f32.mrb[20].mxu1 }
 0x2b4   : > { %1568 = vst.msk [vmem:[#allocation3 + $0x8] sm:$0xff] %vm763_vm1, %v1552_v21  ;;  %v1397_v26 = vadd.f32 %v2232_v23, %v1265_v22  ;;  %v2252_v27 = vpop.f32.mrb[32].mxu0  ;;  %v1356_v29 = vpop.f32.mrb[21].mxu1 }
 0x2b5   : > { %v1425_v30 = vld [vmem:[#allocation3 + $0x30] sm:$0xff]  ;;  %v1395_v32 = vadd.f32 %v1356_v29, %v1263_v28  ;;  %v1520_v33 = vpop.f32.mrb[33].mxu0  ;;  %v2233_v35 = vpop.f32.mrb[22].mxu1 }
 0x2b6   : > { %v1557_v36 = vadd.f32 %v2248_v58, %v1425_v30  ;;  %v1423_v37 = vld [vmem:[#allocation3 + $0x20] sm:$0xff]  ;;  %1413 = vst.msk [vmem:[#allocation3 + $0x50] sm:$0xff] %vm763_vm1, %v1397_v26  ;;  %v1398_v38 = vadd.f32 %v2233_v35, %v1266_v34  ;;  %v2253_v39 = vpop.f32.mrb[34].mxu0  ;;  %v1359_v13 = vpop.f32.mrb[23].mxu1 }
 0x2b7   : > { %v1555_v41 = vadd.f32 %v1504_v24, %v1423_v37  ;;  %v1426_v42 = vld [vmem:[#allocation3 + $0x38] sm:$0xff]  ;;  %1411 = vst.msk [vmem:[#allocation3 + $0x40] sm:$0xff] %vm763_vm1, %v1395_v32  ;;  %v1396_v43 = vadd.f32 %v1359_v13, %v1264_v40  ;;  %v1523_v44 = vpop.f32.mrb[35].mxu0 }
 0x2b8   : > { %1573 = vst.msk [vmem:[#allocation3 + $0x30] sm:$0xff] %vm763_vm1, %v1557_v36  ;;  %v1558_v45 = vadd.f32 %v2249_v0, %v1426_v42  ;;  %v1424_v25 = vld [vmem:[#allocation3 + $0x28] sm:$0xff]  ;;  %1414 = vst.msk [vmem:[#allocation3 + $0x58] sm:$0xff] %vm763_vm1, %v1398_v38  ;;  %v1585_v47 = vld [vmem:[#allocation3 + $0x10] sm:$0xff] }
 0x2b9   : > { %1571 = vst.msk [vmem:[#allocation3 + $0x20] sm:$0xff] %vm763_vm1, %v1555_v41  ;;  %v1556_v48 = vadd.f32 %v1507_v17, %v1424_v25  ;;  %1412 = vst.msk [vmem:[#allocation3 + $0x48] sm:$0xff] %vm763_vm1, %v1396_v43  ;;  %v1583_v50 = vld [vmem:[#allocation3] sm:$0xff]  ;;  %v1608_v52 = vmul.f32 %v3067_v15, %v1585_v47 }
 0x2ba   : > { %1574 = vst.msk [vmem:[#allocation3 + $0x38] sm:$0xff] %vm763_vm1, %v1558_v45  ;;  %v1606_v31 = vmul.f32 %v3067_v15, %v1583_v50  ;;  %v1586_v53 = vld [vmem:[#allocation3 + $0x18] sm:$0xff] }
 0x2bb   : > { %1572 = vst.msk [vmem:[#allocation3 + $0x28] sm:$0xff] %vm763_vm1, %v1556_v48  ;;  %v2236_v55 = vpop.f32.mrb[24].mxu1  ;;  %v1584_v56 = vld [vmem:[#allocation3 + $0x8] sm:$0xff]  ;;  %v1609_v57 = vmul.f32 %v3067_v15, %v1586_v53  ;;  %v1631_v4 = vadd.f32 %v3077_v51, %v1608_v52 }
 0x2bc   : > { %v1401_v58 = vadd.f32 %v2236_v55, %v1269_v54  ;;  %v1372_v59 = vpop.f32.mrb[25].mxu1  ;;  %v2256_v60 = vpop.f32.mrb[36].mxu0  ;;  %v1607_v24 = vmul.f32 %v3067_v15, %v1584_v56  ;;  %v1629_v61 = vadd.f32 %v3077_v51, %v1606_v31 }
 0x2bd   : > { %v1429_v62 = vld [vmem:[#allocation3 + $0x50] sm:$0xff]  ;;  %v1399_v49 = vadd.f32 %v1372_v59, %v1267_v16  ;;  %v2237_v0 = vpop.f32.mrb[26].mxu1  ;;  %v1536_v1 = vpop.f32.mrb[37].mxu0  ;;  %v1632_v11 = vadd.f32 %v3077_v51, %v1609_v57  ;;  %v1647_v37 = vmax.f32 %v1631_v4, 0.0 }
 0x2be   : > { %v1561_v12 = vadd.f32 %v2252_v27, %v1429_v62  ;;  %v1427_v14 = vld [vmem:[#allocation3 + $0x40] sm:$0xff]  ;;  %1417 = vst.msk [vmem:[#allocation3 + $0x70] sm:$0xff] %vm763_vm1, %v1401_v58  ;;  %v1402_v17 = vadd.f32 %v2237_v0, %v1270_v63  ;;  %v1375_v18 = vpop.f32.mrb[27].mxu1  ;;  %v1630_v19 = vadd.f32 %v3077_v51, %v1607_v24  ;;  %v2257_v20 = vpop.f32.mrb[38].mxu0  ;;  %v1645_v32 = vmax.f32 %v1629_v61, 0.0 }
 0x2bf   : > { %v1559_v21 = vadd.f32 %v1520_v33, %v1427_v14  ;;  %v1430_v22 = vld [vmem:[#allocation3 + $0x58] sm:$0xff]  ;;  %1415 = vst.msk [vmem:[#allocation3 + $0x60] sm:$0xff] %vm763_vm1, %v1399_v49  ;;  %v1400_v23 = vadd.f32 %v1375_v18, %v1268_v46  ;;  %v1648_v26 = vmax.f32 %v1632_v11, 0.0  ;;  %v1539_v28 = vpop.f32.mrb[39].mxu0  ;;  %v1589_v29 = vld [vmem:[#allocation3 + $0x30] sm:$0xff] }
 0x2c0   : > { %1577 = vst.msk [vmem:[#allocation3 + $0x50] sm:$0xff] %vm763_vm1, %v1561_v12  ;;  %v1562_v27 = vadd.f32 %v2253_v39, %v1430_v22  ;;  %v1428_v30 = vld [vmem:[#allocation3 + $0x48] sm:$0xff]  ;;  %1418 = vst.msk [vmem:[#allocation3 + $0x78] sm:$0xff] %vm763_vm1, %v1402_v17  ;;  %v1646_v34 = vmax.f32 %v1630_v19, 0.0  ;;  %v1587_v35 = vld [vmem:[#allocation3 + $0x20] sm:$0xff]  ;;  %v1612_v36 = vmul.f32 %v3067_v15, %v1589_v29 }
 0x2c1   : > { %1575 = vst.msk [vmem:[#allocation3 + $0x40] sm:$0xff] %vm763_vm1, %v1559_v21  ;;  %v1560_v33 = vadd.f32 %v1523_v44, %v1428_v30  ;;  %1416 = vst.msk [vmem:[#allocation3 + $0x68] sm:$0xff] %vm763_vm1, %v1400_v23  ;;  %v1610_v38 = vmul.f32 %v3067_v15, %v1587_v35  ;;  %v1590_v40 = vld [vmem:[#allocation3 + $0x38] sm:$0xff]  ;;  %v1662_v42 = vpack.c.bf16 %v1648_v26, %v1647_v37 }
 0x2c2   : > { %1578 = vst.msk [vmem:[#allocation3 + $0x58] sm:$0xff] %vm763_vm1, %v1562_v27  ;;  %v1661_v39 = vpack.c.bf16 %v1646_v34, %v1645_v32  ;;  %v1588_v13 = vld [vmem:[#allocation3 + $0x28] sm:$0xff]  ;;  %v1613_v41 = vmul.f32 %v3067_v15, %v1590_v40  ;;  %v1635_v44 = vadd.f32 %v3077_v51, %v1612_v36 }
 0x2c3   : > { %1576 = vst.msk [vmem:[#allocation3 + $0x48] sm:$0xff] %vm763_vm1, %v1560_v33  ;;  %v1611_v43 = vmul.f32 %v3067_v15, %v1588_v13  ;;  %v1633_v45 = vadd.f32 %v3077_v51, %v1610_v38 }
 0x2c4   : > { %2260 = vmatprep.mubr.msk.bf16.mxu1 %vm763_vm1, %v1661_v39  ;;  %v1636_v25 = vadd.f32 %v3077_v51, %v1613_v41  ;;  %v1651_v59 = vmax.f32 %v1635_v44, 0.0 }
 0x2c5   : > { %v1433_v47 = vld [vmem:[#allocation3 + $0x70] sm:$0xff]  ;;  %2261 = vmatmul.mubr.msk.bf16.vlgmr.msra.gmra.mrb[28].mxu1 %vm763_vm1, %v1662_v42  ;;  %v1634_v48 = vadd.f32 %v3077_v51, %v1611_v43  ;;  %v1649_v54 = vmax.f32 %v1633_v45, 0.0 }
 0x2c6   : > { %v1565_v50 = vadd.f32 %v2256_v60, %v1433_v47  ;;  %v1431_v52 = vld [vmem:[#allocation3 + $0x60] sm:$0xff]  ;;  %v1652_v56 = vmax.f32 %v1636_v25, 0.0  ;;  %v1842_v25 = vunpack.c.l.bf16 %v2742_v3 }
 0x2c7   : > { %v1563_v31 = vadd.f32 %v1536_v1, %v1431_v52  ;;  %v1434_v53 = vld [vmem:[#allocation3 + $0x78] sm:$0xff]  ;;  %v1650_v55 = vmax.f32 %v1634_v48, 0.0  ;;  %v1593_v57 = vld [vmem:[#allocation3 + $0x50] sm:$0xff] }
 0x2c8   : > { %1581 = vst.msk [vmem:[#allocation3 + $0x70] sm:$0xff] %vm763_vm1, %v1565_v50  ;;  %v1566_v58 = vadd.f32 %v2257_v20, %v1434_v53  ;;  %v1432_v16 = vld [vmem:[#allocation3 + $0x68] sm:$0xff]  ;;  %v1591_v24 = vld [vmem:[#allocation3 + $0x40] sm:$0xff]  ;;  %v1616_v63 = vmul.f32 %v3067_v15, %v1593_v57  ;;  %v1664_v4 = vpack.c.bf16 %v1652_v56, %v1651_v59  ;;  %v1840_v50 = vunpack.c.l.bf16 %v2740_v2 }
 0x2c9   : > { %1579 = vst.msk [vmem:[#allocation3 + $0x60] sm:$0xff] %vm763_vm1, %v1563_v31  ;;  %v1564_v61 = vadd.f32 %v1539_v28, %v1432_v16  ;;  %v1663_v62 = vpack.c.bf16 %v1650_v55, %v1649_v54  ;;  %v1614_v49 = vmul.f32 %v3067_v15, %v1591_v24  ;;  %v1594_v60 = vld [vmem:[#allocation3 + $0x58] sm:$0xff]  ;;  %v1843_v54 = vunpack.c.h.bf16 %v2742_v3 }
 0x2ca   : > { %1582 = vst.msk [vmem:[#allocation3 + $0x78] sm:$0xff] %vm763_vm1, %v1566_v58  ;;  %v1592_v0 = vld [vmem:[#allocation3 + $0x48] sm:$0xff]  ;;  %v1617_v1 = vmul.f32 %v3067_v15, %v1594_v60  ;;  %v1639_v46 = vadd.f32 %v3077_v51, %v1616_v63  ;;  %v1841_v58 = vunpack.c.h.bf16 %v2740_v2  ;;  %v1846_v2 = vunpack.c.l.bf16 %v2754_v6 }
 0x2cb   : > { %1580 = vst.msk [vmem:[#allocation3 + $0x68] sm:$0xff] %vm763_vm1, %v1564_v61  ;;  %2264 = vmatprep.mubr.msk.bf16.mxu1 %vm763_vm1, %v1663_v62  ;;  %v1615_v11 = vmul.f32 %v3067_v15, %v1592_v0  ;;  %v1637_v12 = vadd.f32 %v3077_v51, %v1614_v49 }
 0x2cc   : > { %v1640_v14 = vadd.f32 %v3077_v51, %v1617_v1  ;;  %v1655_v26 = vmax.f32 %v1639_v46, 0.0 }
 0x2cd   : > { %2265 = vmatmul.mubr.msk.bf16.gmra.mrb[32].mxu1 %vm763_vm1, %v1664_v4  ;;  %v1638_v17 = vadd.f32 %v3077_v51, %v1615_v11  ;;  %v1653_v18 = vmax.f32 %v1637_v12, 0.0 }
 0x2ce   : > { %v1656_v20 = vmax.f32 %v1640_v14, 0.0  ;;  %v1844_v14 = vunpack.c.l.bf16 %v2752_v5 }
 0x2cf   : > { %v1654_v19 = vmax.f32 %v1638_v17, 0.0  ;;  %v1597_v21 = vld [vmem:[#allocation3 + $0x70] sm:$0xff] }
 0x2d0   : > { %v1595_v22 = vld [vmem:[#allocation3 + $0x60] sm:$0xff]  ;;  %v1620_v27 = vmul.f32 %v3067_v15, %v1597_v21  ;;  %v1666_v34 = vpack.c.bf16 %v1656_v20, %v1655_v26 }
 0x2d1   : > { %v1665_v23 = vpack.c.bf16 %v1654_v19, %v1653_v18  ;;  %v1618_v28 = vmul.f32 %v3067_v15, %v1595_v22  ;;  %v1598_v29 = vld [vmem:[#allocation3 + $0x78] sm:$0xff]  ;;  %v1847_v19 = vunpack.c.h.bf16 %v2754_v6 }
 0x2d2   : > { %v1596_v30 = vld [vmem:[#allocation3 + $0x68] sm:$0xff]  ;;  %v1621_v32 = vmul.f32 %v3067_v15, %v1598_v29  ;;  %v1643_v38 = vadd.f32 %v3077_v51, %v1620_v27 }
 0x2d3   : > { %2268 = vmatprep.mubr.msk.bf16.mxu1 %vm763_vm1, %v1665_v23  ;;  %v1619_v35 = vmul.f32 %v3067_v15, %v1596_v30  ;;  %v1641_v36 = vadd.f32 %v3077_v51, %v1618_v28  ;;  %v3136_v15 = vld [vmem:[%s3297_s9] ss:$0 sm:$0xff]  ;;  %v1845_v23 = vunpack.c.h.bf16 %v2752_v5  ;;  %v1850_v5 = vunpack.c.l.bf16 %v2762_v8 }
 0x2d4   : > { %v1644_v33 = vadd.f32 %v3077_v51, %v1621_v32  ;;  %v1659_v42 = vmax.f32 %v1643_v38, 0.0 }
 0x2d5   : > { %2269 = vmatmul.mubr.msk.bf16.gmra.mrb[36].mxu1 %vm763_vm1, %v1666_v34  ;;  %v1642_v37 = vadd.f32 %v3077_v51, %v1619_v35  ;;  %v1657_v40 = vmax.f32 %v1641_v36, 0.0  ;;  %v3141_v51 = vld [vmem:[%s3298_s10] ss:$0 sm:$0xff] }
 0x2d6   : > { %v1660_v13 = vmax.f32 %v1644_v33, 0.0 }
 0x2d7   : > { %v1658_v39 = vmax.f32 %v1642_v37, 0.0 }
 0x2d8   : > { %v1668_v43 = vpack.c.bf16 %v1660_v13, %v1659_v42 }
 0x2d9   : > { %v1667_v41 = vpack.c.bf16 %v1658_v39, %v1657_v40  ;;  %v1848_v39 = vunpack.c.l.bf16 %v2760_v7 }
 0x2db   : > { %2272 = vmatprep.mubr.msk.bf16.mxu1 %vm763_vm1, %v1667_v41 }
 0x2dd   : > { %2273 = vmatmul.mubr.msk.bf16.gmra.mrb[40].mxu1 %vm763_vm1, %v1668_v43  ;;  %v1851_v43 = vunpack.c.h.bf16 %v2762_v8 }
 0x398   : > { %v2262_v45 = vpop.f32.mrb[28].mxu1 }
 0x399   : > { %v1803_v44 = vmul.f32 %v2262_v45, %v3136_v15  ;;  %v1731_v47 = vpop.f32.mrb[29].mxu1 }
 0x39a   : > { %v1801_v48 = vmul.f32 %v3136_v15, %v1731_v47  ;;  %v2263_v52 = vpop.f32.mrb[30].mxu1  ;;  %v1849_v47 = vunpack.c.h.bf16 %v2760_v7 }
 0x39b   : > { %v1826_v31 = vadd.f32 %v3141_v51, %v1803_v44  ;;  %v1804_v53 = vmul.f32 %v2263_v52, %v3136_v15  ;;  %v1734_v55 = vpop.f32.mrb[31].mxu1 }
 0x39c   : > { %v1824_v56 = vadd.f32 %v3141_v51, %v1801_v48  ;;  %v1802_v57 = vmul.f32 %v3136_v15, %v1734_v55 }
 0x39d   : > { %v1858_v16 = vadd.f32 %v1842_v25, %v1826_v31  ;;  %v1827_v59 = vadd.f32 %v3141_v51, %v1804_v53 }
 0x39e   : > { %v1856_v24 = vadd.f32 %v1840_v50, %v1824_v56  ;;  %v1825_v61 = vadd.f32 %v3141_v51, %v1802_v57 }
 0x39f   : > { %v1874_v62 = vmax.f32 %v1858_v16, 0.0  ;;  %v1859_v49 = vadd.f32 %v1843_v54, %v1827_v59 }
 0x3a0   : > { %v1872_v60 = vmax.f32 %v1856_v24, 0.0  ;;  %v1857_v63 = vadd.f32 %v1841_v58, %v1825_v61  ;;  %v2266_v3 = vpop.f32.mrb[32].mxu1  ;;  %v1854_v58 = vunpack.c.l.bf16 %v2770_v10  ;;  %v1852_v61 = vunpack.c.l.bf16 %v2768_v9 }
 0x3a1   : > { %1890 = vst.msk [vmem:[%s2878_s22 + $0x10] sm:$0xff] %vm545_vm0, %v1874_v62  ;;  %v1875_v0 = vmax.f32 %v1859_v49, 0.0  ;;  %v1807_v1 = vmul.f32 %v2266_v3, %v3136_v15  ;;  %v1747_v4 = vpop.f32.mrb[33].mxu1 }
 0x3a2   : > { %1888 = vst.msk [vmem:[%s2878_s22] sm:$0xff] %vm545_vm0, %v1872_v60  ;;  %v1873_v11 = vmax.f32 %v1857_v63, 0.0  ;;  %v1805_v12 = vmul.f32 %v3136_v15, %v1747_v4  ;;  %v2267_v17 = vpop.f32.mrb[34].mxu1  ;;  %v1855_v63 = vunpack.c.h.bf16 %v2770_v10 }
 0x3a3   : > { %1891 = vst.msk [vmem:[%s2878_s22 + $0x18] sm:$0xff] %vm545_vm0, %v1875_v0  ;;  %v1830_v46 = vadd.f32 %v3141_v51, %v1807_v1  ;;  %v1808_v18 = vmul.f32 %v2267_v17, %v3136_v15  ;;  %v1750_v20 = vpop.f32.mrb[35].mxu1 }
 0x3a4   : > { %1889 = vst.msk [vmem:[%s2878_s22 + $0x8] sm:$0xff] %vm545_vm0, %v1873_v11  ;;  %v1828_v21 = vadd.f32 %v3141_v51, %v1805_v12  ;;  %v1806_v22 = vmul.f32 %v3136_v15, %v1750_v20 }
 0x3a5   : > { %v1862_v26 = vadd.f32 %v1846_v2, %v1830_v46  ;;  %v1831_v28 = vadd.f32 %v3141_v51, %v1808_v18  ;;  %v1853_v2 = vunpack.c.h.bf16 %v2768_v9 }
 0x3a6   : > { %v1860_v29 = vadd.f32 %v1844_v14, %v1828_v21  ;;  %v1829_v27 = vadd.f32 %v3141_v51, %v1806_v22 }
 0x3a7   : > { %v1878_v30 = vmax.f32 %v1862_v26, 0.0  ;;  %v1863_v32 = vadd.f32 %v1847_v19, %v1831_v28 }
 0x3a8   : > { %v1876_v6 = vmax.f32 %v1860_v29, 0.0  ;;  %v1861_v34 = vadd.f32 %v1845_v23, %v1829_v27  ;;  %v2270_v35 = vpop.f32.mrb[36].mxu1 }
 0x3a9   : > { %1894 = vst.msk [vmem:[%s2878_s22 + $0x30] sm:$0xff] %vm545_vm0, %v1878_v30  ;;  %v1879_v36 = vmax.f32 %v1863_v32, 0.0  ;;  %v1811_v33 = vmul.f32 %v2270_v35, %v3136_v15  ;;  %v1763_v37 = vpop.f32.mrb[37].mxu1 }
 0x3aa   : > { %1892 = vst.msk [vmem:[%s2878_s22 + $0x20] sm:$0xff] %vm545_vm0, %v1876_v6  ;;  %v1877_v38 = vmax.f32 %v1861_v34, 0.0  ;;  %v1809_v40 = vmul.f32 %v3136_v15, %v1763_v37  ;;  %v2271_v13 = vpop.f32.mrb[38].mxu1 }
 0x3ab   : > { %1895 = vst.msk [vmem:[%s2878_s22 + $0x38] sm:$0xff] %vm545_vm0, %v1879_v36  ;;  %v1834_v41 = vadd.f32 %v3141_v51, %v1811_v33  ;;  %v1812_v42 = vmul.f32 %v2271_v13, %v3136_v15  ;;  %v1766_v45 = vpop.f32.mrb[39].mxu1 }
 0x3ac   : > { %1893 = vst.msk [vmem:[%s2878_s22 + $0x28] sm:$0xff] %vm545_vm0, %v1877_v38  ;;  %v1832_v44 = vadd.f32 %v3141_v51, %v1809_v40  ;;  %v1810_v25 = vmul.f32 %v3136_v15, %v1766_v45 }
 0x3ad   : > { %v1866_v48 = vadd.f32 %v1850_v5, %v1834_v41  ;;  %v1835_v50 = vadd.f32 %v3141_v51, %v1812_v42 }
 0x3ae   : > { %v1864_v52 = vadd.f32 %v1848_v39, %v1832_v44  ;;  %v1833_v31 = vadd.f32 %v3141_v51, %v1810_v25 }
 0x3af   : > { %v1882_v53 = vmax.f32 %v1866_v48, 0.0  ;;  %v1867_v8 = vadd.f32 %v1851_v43, %v1835_v50 }
 0x3b0   : > { %v1880_v54 = vmax.f32 %v1864_v52, 0.0  ;;  %v1865_v55 = vadd.f32 %v1849_v47, %v1833_v31  ;;  %v2274_v56 = vpop.f32.mrb[40].mxu1 }
 0x3b1   : > { %1898 = vst.msk [vmem:[%s2878_s22 + $0x50] sm:$0xff] %vm545_vm0, %v1882_v53  ;;  %v1883_v57 = vmax.f32 %v1867_v8, 0.0  ;;  %v1815_v7 = vmul.f32 %v2274_v56, %v3136_v15  ;;  %v1779_v16 = vpop.f32.mrb[41].mxu1 }
 0x3b2   : > { %1896 = vst.msk [vmem:[%s2878_s22 + $0x40] sm:$0xff] %vm545_vm0, %v1880_v54  ;;  %v1881_v59 = vmax.f32 %v1865_v55, 0.0  ;;  %v1813_v24 = vmul.f32 %v3136_v15, %v1779_v16  ;;  %v2275_v62 = vpop.f32.mrb[42].mxu1 }
 0x3b3   : > { %1899 = vst.msk [vmem:[%s2878_s22 + $0x58] sm:$0xff] %vm545_vm0, %v1883_v57  ;;  %v1838_v49 = vadd.f32 %v3141_v51, %v1815_v7  ;;  %v1816_v60 = vmul.f32 %v2275_v62, %v3136_v15  ;;  %v1782_v3 = vpop.f32.mrb[43].mxu1 }
 0x3b4   : > { %1897 = vst.msk [vmem:[%s2878_s22 + $0x48] sm:$0xff] %vm545_vm0, %v1881_v59  ;;  %v1836_v0 = vadd.f32 %v3141_v51, %v1813_v24  ;;  %v1814_v1 = vmul.f32 %v3136_v15, %v1782_v3 }
 0x3b5   : > { %v1870_v4 = vadd.f32 %v1854_v58, %v1838_v49  ;;  %v1839_v11 = vadd.f32 %v3141_v51, %v1816_v60 }
 0x3b6   : > { %v1868_v12 = vadd.f32 %v1852_v61, %v1836_v0  ;;  %v1837_v10 = vadd.f32 %v3141_v51, %v1814_v1 }
 0x3b7   : > { %v1886_v14 = vmax.f32 %v1870_v4, 0.0  ;;  %v1871_v17 = vadd.f32 %v1855_v63, %v1839_v11 }
 0x3b8   : > { %v1884_v46 = vmax.f32 %v1868_v12, 0.0  ;;  %v1869_v18 = vadd.f32 %v1853_v2, %v1837_v10 }
 0x3b9   : > { %1902 = vst.msk [vmem:[%s2878_s22 + $0x70] sm:$0xff] %vm545_vm0, %v1886_v14  ;;  %v1887_v15 = vmax.f32 %v1871_v17, 0.0 }
 0x3ba   : > { %1900 = vst.msk [vmem:[%s2878_s22 + $0x60] sm:$0xff] %vm545_vm0, %v1884_v46  ;;  %v1885_v9 = vmax.f32 %v1869_v18, 0.0 }
 0x3bb   : > { %1903 = vst.msk [vmem:[%s2878_s22 + $0x78] sm:$0xff] %vm545_vm0, %v1887_v15 }
 0x3bc   : > { %1901 = vst.msk [vmem:[%s2878_s22 + $0x68] sm:$0xff] %vm545_vm0, %v1885_v9 }
 0x3bd   : > { %2501 = shalt.err (!%p2498_p11)
}
 0x3be   : > { %s2502_s22 = scalar_lea.hbm %s3223_s19, 2048  ;;  %s2506_s13 = scalar_lea.hbm %s3326_s28, 8192 }
 0x3bf   : > { %p2503_p12 = scmp.ne.s32.totalorder %s3223_s19, %s2502_s22  ;;  %p2507_p1 = scmp.lt.u32.totalorder %s3223_s19, %s3326_s28 }
 0x3c0   : > { %p2508_p2 = scmp.lt.u32.totalorder %s2506_s13, %s2502_s22  ;;  %p2510_p5 = scmp.lt.u32.totalorder %s2502_s22, %s3223_s19 }
 0x3c1   : > { %p2504_p13 = pnand %p2503_p12, %p2702_p3 }
 0x3c2   : > { %p2509_p4 = por %p2508_p2, %p2507_p1 }
 0x3c3   : > { %p2505_p0 = pneg %p2504_p13 }
 0x3c4   : > { %p2511_p6 = por %p2510_p5, %p2509_p4 }
 0x3c6   : > { %p2512_p7 = pnand %p2511_p6, %p2505_p0 }
 0x3c8   : > { %2515 = shalt.err (!%p2512_p7)
}
 0x3c9   : > { %s2590_s2 = smov 128  }
 0x3ca   : > { %2285 = dma.vmem_to_hbm [thread:$0]  (%p2702_p3), %s3227_s14, 2048, %s3223_s19, %s3235_s12, %s2590_s2, %s2590_s2, %s2588_s24  }
 0x3cb PF: > { %s3328_s11 = sld [smem:[#allocation11_spill]]  ;;  %s3329_s17 = sld [smem:[#allocation7_spill]] }
 0x3d1   : > { %p2291_p9 = scmp.ge.s32.totalorder %s3328_s11, 2  ;;  %s1936_s16 = sand.u32 1, %s3329_s17  }
 0x3d2   : > { %s1937_s25 = scalar_lea.sflag [#allocation5], %s1936_s16 }
 0x3d3   : > { %p2288_p10 = pnand %p2291_p9, %p2711_p8 }
 0x3d5   : > { %2549 = dma.done.wait (!%p2288_p10), %s1937_s25, 2048  }
 0x3d6   : > { %2551 = vsyncadd (!%p2288_p10), %s1937_s25, 4294965248  ;;  %s24_s24 = sadd.s32 1, %s3328_s11   ;;  %s3331_s30 = sld [smem:[#allocation8_spill]] }
 0x3d7   : > { %p21_p11 = scmp.ge.s32.totalorder %s24_s24, 6   ;;  %s3332_s19 = sld [smem:[#allocation15_spill]] }
 0x3d8   : > { %s3333_s20 = sld [smem:[#allocation9_spill]]  ;;  %s3334_s21 = sld [smem:[#allocation10_spill]] }
 0x3d9   : > { %s3335_s22 = sld [smem:[#allocation12_spill]]  ;;  %s3336_s23 = sld [smem:[#allocation13_spill]] }
 0x3da   : > { %s3337_s17 = smov %s2558_s18  ;;  %23 = sbr.rel (!%p21_p11) target bundleno = 8 (0x8), region = 113 }
 0x3dc   : > { %s3338_s18 = smov %s3331_s30 }
 0x3e1   :  { %1942 = vsyncpa [#allocation5], 1 }
 0x3e2   :  { %1944 = vsyncpa [#allocation5 + $0x1], 1 }

</bundles_post_ra>
